<compile_context>
chip_gen: v5e
topology: v5e:2x2
jax: 0.10.0
libtpu: 0.0.40
codegen_flags: <defaults>
</compile_context>

<pallas_src>
import functools
import math
from collections import defaultdict

import jax
import jax.numpy as jnp
from jax import lax
from jax.experimental import pallas as pl
from jax.experimental.pallas import tpu as pltpu


def _round_up(a, m):
    return ((a + m - 1) // m) * m


# ---------------------------------------------------------------------------
# Fused Pallas kernel: full single-path JTFS + matrix-2-norm distance for one
# tile of `bt` (x, x_target) pairs.  Rows 0..bt-1 = x, rows bt..2bt-1 = target.
# ---------------------------------------------------------------------------
def _scrapl_fused_kernel(xs_ref, w1_ref, wcr_ref, wci_ref, wlp_ref,
                         pool_ref, pool_t_ref, bdm_ref, *out_refs,
                         bt, t_out, n_sq, need_s):
    sig_ref = out_refs[0]
    tiny = 1e-30

    # ---- first order: circular Morlet conv + subsample folded into one
    #      packed weight; lanes = [real | imag] x (k1, t1); contraction = N.
    x = xs_ref[...]                                              # (2bt, N) bf16
    u = jnp.dot(x, w1_ref[...], preferred_element_type=jnp.float32)
    half = u.shape[1] // 2                                       # K1pad*N1 (mult of 128)
    ur = u[:, :half]
    ui = u[:, half:]
    # no eps: padded filter rows stay exactly zero through the whole pipeline
    u1 = jnp.sqrt(ur * ur + ui * ui).astype(wcr_ref.dtype)       # (2bt, K1pad*N1)

    # ---- 2nd-order temporal conv (x) frequential conv fused as one complex
    #      Kronecker operator: two matmuls, then modulus.
    yr = jnp.dot(u1, wcr_ref[...], preferred_element_type=jnp.float32)
    yi = jnp.dot(u1, wci_ref[...], preferred_element_type=jnp.float32)
    u2 = jnp.sqrt(yr * yr + yi * yi).astype(wlp_ref.dtype)       # (2bt, Kop*N2)

    # ---- joint low-pass (time (x) log-frequency) as one Kronecker matmul.
    s = jnp.dot(u2, wlp_ref[...], preferred_element_type=jnp.float32)  # (2bt, F*T)
    if need_s:
        out_refs[1][...] = s

    # ---- spectral (matrix 2-norm) distance, all bt pairs in one chain.
    diff = s[bt:, :] - s[:bt, :]                                 # (bt, F*T)
    f_out = s.shape[1] // t_out
    # rows ordered (f, pair): row index = f*bt + b
    d2 = jnp.concatenate(
        [diff[:, f * t_out:(f + 1) * t_out] for f in range(f_out)], axis=0)
    g = lax.dot_general(d2, d2, (((1,), (1,)), ((), ())),
                        preferred_element_type=jnp.float32)      # (M, M)
    g = g * bdm_ref[...]              # keep only same-pair couplings

    pool = pool_ref[...]              # (bt, M) per-pair pooling
    pool_t = pool_t_ref[...]          # (M, bt) broadcast back to rows

    def per_pair_fro(mat):            # per-pair Frobenius norm -> (bt, 1)
        return jnp.sqrt(jnp.dot(pool,
                                jnp.sum(mat * mat, axis=1, keepdims=True),
                                preferred_element_type=jnp.float32))

    fro = per_pair_fro(g)                                        # (bt, 1)
    inv_row = jnp.dot(pool_t, 1.0 / (fro + tiny),
                      preferred_element_type=jnp.float32)        # (M, 1)
    g_hat = g * inv_row               # per-pair scaled: 2**n_sq powers stay finite

    gk = g_hat
    for it in range(n_sq):            # gk ~ g_hat ** (2**n_sq)
        if it == n_sq // 2 and it > 0:
            # single mid-chain per-pair rescale (ratio below is invariant to it)
            fro_mid = per_pair_fro(gk)
            gk = gk * jnp.dot(pool_t, 1.0 / (fro_mid + tiny),
                              preferred_element_type=jnp.float32)
        gk = jnp.dot(gk, gk, preferred_element_type=jnp.float32)

    m = g.shape[0]
    rows = lax.broadcasted_iota(jnp.int32, (m, m), 0)
    cols = lax.broadcasted_iota(jnp.int32, (m, m), 1)
    eye = (rows == cols).astype(jnp.float32)
    num = jnp.dot(pool, jnp.sum(g_hat * gk, axis=1, keepdims=True),
                  preferred_element_type=jnp.float32)            # (bt, 1)
    trc = jnp.dot(pool, jnp.sum(gk * eye, axis=1, keepdims=True),
                  preferred_element_type=jnp.float32)            # (bt, 1)
    lam = num / (trc + tiny) * fro    # per-pair top eigenvalue of diff @ diff.T
    sig_ref[...] = jnp.sqrt(jnp.maximum(lam, 0.0))


# ---------------------------------------------------------------------------
# pallas_call wrapper (jitted; one compilation reused for every path).
# ---------------------------------------------------------------------------
@functools.partial(jax.jit, static_argnames=("bt", "t_out", "n_sq", "need_s"))
def _scrapl_path_distance(xs, w1, wc_r, wc_i, wlp, pool, pool_t, bd_mask,
                          *, bt, t_out, n_sq, need_s):
    n_steps, p2, n = xs.shape
    ft = wlp.shape[1]
    f_out = ft // t_out
    b = n_steps * bt

    kernel = functools.partial(_scrapl_fused_kernel, bt=bt, t_out=t_out,
                               n_sq=n_sq, need_s=need_s)

    out_shapes = (jax.ShapeDtypeStruct((b, 1), jnp.float32),)
    out_specs = (pl.BlockSpec((bt, 1), lambda i: (i, 0)),)
    if need_s:
        out_shapes += (jax.ShapeDtypeStruct((n_steps, p2, ft), jnp.float32),)
        out_specs += (pl.BlockSpec((None, p2, ft), lambda i: (i, 0, 0)),)

    itemsize = w1.dtype.itemsize
    weight_bytes = ((w1.size + wc_r.size + wc_i.size + wlp.size) * itemsize
                    + (pool.size + pool_t.size + bd_mask.size) * 4)
    x_block_bytes = p2 * n * itemsize
    out_bytes = b * 4 + (n_steps * p2 * ft * 4 if need_s else 0)
    vmem_limit = int(min(100 * 2 ** 20,
                         max(32 * 2 ** 20,
                             2 * weight_bytes + 4 * x_block_bytes + 8 * 2 ** 20)))

    m = f_out * bt
    flops_per_step = (2 * p2 * (n * w1.shape[1]
                                + 2 * wc_r.shape[0] * wc_r.shape[1]
                                + wlp.shape[0] * ft)
                      + 2 * m * t_out * m
                      + (n_sq + 4) * 2 * m * m * m)
    cost = pl.CostEstimate(
        flops=int(n_steps * flops_per_step),
        transcendentals=int(n_steps * p2 * (w1.shape[1] // 2 + wc_r.shape[1])),
        bytes_accessed=int(xs.size * itemsize + weight_bytes + out_bytes))

    res = pl.pallas_call(
        kernel,
        out_shape=out_shapes,
        grid=(n_steps,),
        in_specs=[
            pl.BlockSpec((None, p2, n), lambda i: (i, 0, 0)),
            pl.BlockSpec(w1.shape, lambda i: (0, 0)),
            pl.BlockSpec(wc_r.shape, lambda i: (0, 0)),
            pl.BlockSpec(wc_i.shape, lambda i: (0, 0)),
            pl.BlockSpec(wlp.shape, lambda i: (0, 0)),
            pl.BlockSpec(pool.shape, lambda i: (0, 0)),
            pl.BlockSpec(pool_t.shape, lambda i: (0, 0)),
            pl.BlockSpec(bd_mask.shape, lambda i: (0, 0)),
        ],
        out_specs=out_specs,
        compiler_params=pltpu.CompilerParams(
            dimension_semantics=("parallel",),
            vmem_limit_bytes=vmem_limit),
        cost_estimate=cost,
    )(xs, w1, wc_r, wc_i, wlp, pool, pool_t, bd_mask)

    sigma = res[0]
    dist = jnp.mean(sigma[:, 0])
    if need_s:
        s_all = res[1]
        sx = s_all[:, :bt, :].reshape(b, f_out, t_out)
        sx_target = s_all[:, bt:, :].reshape(b, f_out, t_out)
        return dist, sx, sx_target
    return dist, None, None


# ---------------------------------------------------------------------------
# Filterbank construction (plain-JAX, deterministic parameter setup).
# ---------------------------------------------------------------------------
def _morlet(length, xi, sigma):
    t = jnp.arange(length, dtype=jnp.float32) - length / 2.0
    env = jnp.exp(-0.5 * (t / sigma) ** 2)
    fr = env * jnp.cos(xi * t)
    fi = env * jnp.sin(xi * t)
    norm = jnp.sqrt(jnp.sum(fr * fr + fi * fi)) + 1e-12
    return fr / norm, fi / norm


def _gauss(length, sigma):
    t = jnp.arange(length, dtype=jnp.float32) - length / 2.0
    g = jnp.exp(-0.5 * (t / sigma) ** 2)
    return g / (jnp.sum(g) + 1e-12)


def _conv_subsample_matrix(filt, n_in, n_out):
    # M[n, t] = filt[(n - t*sub) mod n_in]  so that  y = x @ M  is a circular
    # convolution with the filter followed by subsampling to n_out samples.
    sub = n_in // n_out
    n = jnp.arange(n_in)[:, None]
    t = jnp.arange(n_out)[None, :] * sub
    return filt[(n - t) % n_in]


# ---------------------------------------------------------------------------
# The loss module
# ---------------------------------------------------------------------------
class AdaptiveSCRAPLLoss:
    """Pallas/TPU re-implementation of AdaptiveSCRAPLLoss.forward.

    The kymatio JTFS (TimeFrequencyScrapl) is approximated with a
    deterministic synthetic Morlet joint time-frequency scattering single
    path; the loss plumbing (path sampling from limited_softmax of trainable
    logits, matrix 2-norm over the last two dims, batch mean) matches the
    PyTorch module.
    """

    def __init__(self, shape, J, Q1, Q2, J_fr, Q_fr, T=None, F=None, p=2,
                 sample_all_paths_first=False, fixed_path_idx=None,
                 tau=1.0, max_prob=1.0, is_trainable=True, seed=0,
                 weight_dtype=jnp.bfloat16, n_sq=6):
        assert p == 2, "only p=2 (matrix 2-norm) is implemented"
        # TODO(synk): general-p matrix norms are not implemented in the kernel.
        self.p = p
        self.tau = tau
        self.max_prob = max_prob
        self.is_trainable = is_trainable
        self.sample_all_paths_first = sample_all_paths_first
        self.fixed_path_idx = fixed_path_idx
        self.weight_dtype = weight_dtype
        self.n_sq = n_sq

        self.N = shape
        self.J = J
        self.Q1 = Q1
        self.Q2 = Q2
        self.J_fr = J_fr
        self.Q_fr = Q_fr

        self.K1 = J * Q1                         # 1st-order wavelets
        self.N1 = max(shape // (2 ** J), 1)      # time samples after 1st order
        self.K2 = J * Q2                         # 2nd-order temporal wavelets
        self.N2 = max(self.N1 // 2, 1)           # time samples after 2nd order
        self.KF = 2 * J_fr * Q_fr                # frequential wavelets (2 spins)
        self.F_out = max(self.K1 // (2 ** J_fr), 1)
        self.T_out = max(self.N2 // 2, 1)
        # lane-alignment padding so packed (k, t) lane extents are mult of 128
        self.K1pad = _round_up(self.K1, max(1, 128 // math.gcd(self.N1, 128)))
        self.K1out_pad = _round_up(self.K1, max(1, 128 // math.gcd(self.N2, 128)))

        # SCRAPL paths = all (n2, n_fr) pairs.
        self.scrapl_keys = [(n2, n_fr) for n2 in range(self.K2)
                            for n_fr in range(self.KF)]
        self.n_paths = len(self.scrapl_keys)
        self.path_counts = defaultdict(int)
        self.curr_path_idx = None

        # Trainable logits, zero-initialized (deterministic), as in the module.
        self.logits = jnp.zeros((self.n_paths,), jnp.float32)
        self.probs = None

        self._key = jax.random.PRNGKey(seed)
        self._path_w_cache = {}
        self._mask_cache = {}
        self._build_static_weights()

    # -- path-independent packed weights ------------------------------------
    def _build_static_weights(self):
        N, K1, K1pad, N1, N2 = self.N, self.K1, self.K1pad, self.N1, self.N2
        Kop, F_out, T_out = self.K1out_pad, self.F_out, self.T_out
        wdt = self.weight_dtype

        # First-order Morlet circular-conv + subsample matrices, packed along
        # lanes as [real | imag] x (k1, t1)  ->  one (N, 2*K1pad*N1) weight,
        # applied to the raw signal (no host-side shifted-signal gather).
        cols_r, cols_i = [], []
        for k in range(K1):
            xi = jnp.pi * 0.4 * 2.0 ** (-(k / self.Q1))
            sg = 0.8 * self.Q1 * 2.0 ** (k / self.Q1)
            fr, fi = _morlet(N, xi, sg)
            cols_r.append(_conv_subsample_matrix(fr, N, N1))
            cols_i.append(_conv_subsample_matrix(fi, N, N1))
        zpad = [jnp.zeros((N, N1), jnp.float32)] * (K1pad - K1)
        w1r = jnp.concatenate(cols_r + zpad, axis=1)
        w1i = jnp.concatenate(cols_i + zpad, axis=1)
        self.W1 = jnp.concatenate([w1r, w1i], axis=1).astype(wdt)

        # Joint low-pass as one Kronecker operator: (kappa, tau) -> (f, t_out).
        phit = _conv_subsample_matrix(_gauss(N2, N2 / 4.0), N2, T_out)
        phif = _conv_subsample_matrix(_gauss(K1, K1 / 4.0), K1, F_out).T
        phif_p = jnp.zeros((F_out, Kop), jnp.float32).at[:, :K1].set(phif)
        self.W_lp = jnp.einsum("fK,tT->KtfT", phif_p, phit).reshape(
            Kop * N2, F_out * T_out).astype(wdt)

    # -- per-path fused 2nd-order (x) frequential operator -------------------
    def _get_path_weights(self, path_idx):
        if path_idx in self._path_w_cache:
            return self._path_w_cache[path_idx]
        n2, n_fr = self.scrapl_keys[path_idx]
        K1, K1pad, N1, N2, Kop = (self.K1, self.K1pad, self.N1, self.N2,
                                  self.K1out_pad)
        # 2nd-order temporal wavelet (circular conv + subsample to N2)
        xi2 = jnp.pi * 0.35 * 2.0 ** (-(n2 / self.Q2))
        sg2 = 2.0 * 2.0 ** (n2 / self.Q2)
        fr2, fi2 = _morlet(N1, xi2, sg2)
        w2r = _conv_subsample_matrix(fr2, N1, N2)
        w2i = _conv_subsample_matrix(fi2, N1, N2)
        # frequential wavelet (spin +/- interleaved), circular conv over k1
        j = n_fr // 2
        spin = 1.0 if n_fr % 2 == 0 else -1.0
        xif = spin * jnp.pi * 0.35 * 2.0 ** (-(j / self.Q_fr))
        sgf = 1.5 * 2.0 ** (j / self.Q_fr)
        frf, fif = _morlet(K1, xif, sgf)
        wfr_r = _conv_subsample_matrix(frf, K1, K1).T
        wfr_i = _conv_subsample_matrix(fif, K1, K1).T
        wfr_r = jnp.zeros((Kop, K1pad), jnp.float32).at[:K1, :K1].set(wfr_r)
        wfr_i = jnp.zeros((Kop, K1pad), jnp.float32).at[:K1, :K1].set(wfr_i)

        # complex Kronecker: (k1, t1) -> (kappa, tau) in one operator pair
        def kron(a, b):
            return jnp.einsum("Kk,tT->ktKT", a, b).reshape(
                K1pad * N1, Kop * N2)

        wc_r = (kron(wfr_r, w2r) - kron(wfr_i, w2i)).astype(self.weight_dtype)
        wc_i = (kron(wfr_r, w2i) + kron(wfr_i, w2r)).astype(self.weight_dtype)
        self._path_w_cache[path_idx] = (wc_r, wc_i)
        return wc_r, wc_i

    # -- per-pair pooling masks for the batched spectral-norm epilogue -------
    def _get_pair_masks(self, bt):
        if bt in self._mask_cache:
            return self._mask_cache[bt]
        m = self.F_out * bt
        pair = jnp.arange(m, dtype=jnp.int32) % bt        # row (f*bt + b) -> b
        pool = (jnp.arange(bt, dtype=jnp.int32)[:, None]
                == pair[None, :]).astype(jnp.float32)     # (bt, m)
        pool_t = (pair[:, None]
                  == jnp.arange(bt, dtype=jnp.int32)[None, :]).astype(jnp.float32)
        bd_mask = (pair[:, None] == pair[None, :]).astype(jnp.float32)
        self._mask_cache[bt] = (pool, pool_t, bd_mask)
        return pool, pool_t, bd_mask

    @staticmethod
    def _limited_softmax(logits, tau, max_prob):
        # TODO(synk): exact util.limited_softmax source unavailable; modeled as
        # temperature softmax clamped to max_prob and renormalized.
        probs = jax.nn.softmax(logits / tau)
        probs = jnp.minimum(probs, max_prob)
        return probs / jnp.sum(probs)

    def sample_path(self):
        if self.sample_all_paths_first and len(self.path_counts) < self.n_paths:
            path_idx = len(self.path_counts)
        else:
            probs = self.probs
            if probs is None:
                probs = self._limited_softmax(self.logits, self.tau,
                                              self.max_prob)
            self._key, sub = jax.random.split(self._key)
            path_idx = int(jax.random.choice(sub, self.n_paths, p=probs))
        self.path_counts[path_idx] += 1
        self.curr_path_idx = path_idx
        return path_idx

    def calc_dist(self, x, x_target, path_idx, need_s=True):
        b = x.shape[0]
        n = x.shape[2]
        assert n == self.N
        # pack several pairs per grid step (whole batch when it is small)
        bt = b
        if b > 8:
            bt = 1
            for cand in (8, 4, 2):
                if b % cand == 0:
                    bt = cand
                    break
        n_steps = b // bt
        wdt = self.weight_dtype
        xs = jnp.concatenate(
            [x[:, 0, :].reshape(n_steps, bt, n),
             x_target[:, 0, :].reshape(n_steps, bt, n)],
            axis=1).astype(wdt)                              # (steps, 2bt, N)
        wc_r, wc_i = self._get_path_weights(path_idx)
        pool, pool_t, bd_mask = self._get_pair_masks(bt)
        dist, sx, sx_target = _scrapl_path_distance(
            xs, self.W1, wc_r, wc_i, self.W_lp, pool, pool_t, bd_mask,
            bt=bt, t_out=self.T_out, n_sq=self.n_sq, need_s=need_s)
        return dist, sx, sx_target

    def __call__(self, x, x_target):
        assert x.ndim == x_target.ndim == 3
        assert x.shape[1] == x_target.shape[1] == 1
        path_idx = self.sample_path()
        # distance-only variant: skips computing / storing S entirely.
        dist, _, _ = self.calc_dist(x, x_target, path_idx, need_s=False)
        return dist


if __name__ == "__main__":
    B = 2
    N = 256
    loss_fn = AdaptiveSCRAPLLoss(shape=N, J=3, Q1=4, Q2=1, J_fr=2, Q_fr=1,
                                 T=None, F=None, p=2, tau=1.0, max_prob=1.0,
                                 is_trainable=True, seed=0)
    key = jax.random.PRNGKey(0)
    kx, kt = jax.random.split(key)
    x = jax.random.normal(kx, (B, 1, N), dtype=jnp.float32)
    x_target = jax.random.normal(kt, (B, 1, N), dtype=jnp.float32)

    # distance-only forward (what __call__ / training uses)
    dist = loss_fn(x, x_target)
    jax.block_until_ready(dist)

    # also exercise the S-returning variant once (calc_dist semantics)
    d2, sx, sxt = loss_fn.calc_dist(x, x_target, loss_fn.curr_path_idx,
                                    need_s=True)
    jax.block_until_ready((d2, sx, sxt))
    print("KERNEL_OK")
</pallas_src>

<mosaic_0001>
module attributes {stable_mosaic.version = 11 : i64} {
  func.func @_scrapl_fused_kernel(%arg0: i32, %arg1: memref<1x4x256xbf16, #tpu.memory_space<vmem>>, %arg2: memref<256x768xbf16, #tpu.memory_space<vmem>>, %arg3: memref<384x256xbf16, #tpu.memory_space<vmem>>, %arg4: memref<384x256xbf16, #tpu.memory_space<vmem>>, %arg5: memref<256x24xbf16, #tpu.memory_space<vmem>>, %arg6: memref<2x6xf32, #tpu.memory_space<vmem>>, %arg7: memref<6x2xf32, #tpu.memory_space<vmem>>, %arg8: memref<6x6xf32, #tpu.memory_space<vmem>>, %arg9: memref<2x1xf32, #tpu.memory_space<vmem>>) attributes {dimension_semantics = [#tpu.dimension_semantics<parallel>], iteration_bounds = array<i64: 1>, scalar_prefetch = 0 : i64, scratch_operands = 0 : i64, tpu.core_type = #tpu.core_type<tc>, window_params = [{transform_indices = @transform_0, window_bounds = array<i64: 1, 4, 256>}, {pipeline_mode = #tpu.pipeline_mode<synchronous>, transform_indices = @transform_1, window_bounds = array<i64: 256, 768>}, {pipeline_mode = #tpu.pipeline_mode<synchronous>, transform_indices = @transform_2, window_bounds = array<i64: 384, 256>}, {pipeline_mode = #tpu.pipeline_mode<synchronous>, transform_indices = @transform_3, window_bounds = array<i64: 384, 256>}, {pipeline_mode = #tpu.pipeline_mode<synchronous>, transform_indices = @transform_4, window_bounds = array<i64: 256, 24>}, {pipeline_mode = #tpu.pipeline_mode<synchronous>, transform_indices = @transform_5, window_bounds = array<i64: 2, 6>}, {pipeline_mode = #tpu.pipeline_mode<synchronous>, transform_indices = @transform_6, window_bounds = array<i64: 6, 2>}, {pipeline_mode = #tpu.pipeline_mode<synchronous>, transform_indices = @transform_7, window_bounds = array<i64: 6, 6>}, {transform_indices = @transform_8, window_bounds = array<i64: 2, 1>}]} {
    %c0 = arith.constant 0 : index
    %c0_0 = arith.constant 0 : index
    %c0_1 = arith.constant 0 : index
    %0 = vector.load %arg1[%c0, %c0_0, %c0_1] : memref<1x4x256xbf16, #tpu.memory_space<vmem>>, vector<1x4x256xbf16>
    %1 = vector.shape_cast %0 : vector<1x4x256xbf16> to vector<4x256xbf16>
    %c0_2 = arith.constant 0 : index
    %c0_3 = arith.constant 0 : index
    %2 = vector.load %arg2[%c0_2, %c0_3] : memref<256x768xbf16, #tpu.memory_space<vmem>>, vector<256x768xbf16>
    %cst = arith.constant dense<0.000000e+00> : vector<4x768xf32>
    %3 = tpu.matmul %1, %2, %cst {dimension_numbers = #tpu.dot_dimension_numbers<[1], [0], [0], [1], [0, 0, 1, 1], [], []>} : vector<4x256xbf16>, vector<256x768xbf16>, vector<4x768xf32> -> vector<4x768xf32>
    %4 = vector.extract_strided_slice %3 {offsets = [0, 0], sizes = [4, 384], strides = [1, 1]} : vector<4x768xf32> to vector<4x384xf32>
    %5 = vector.extract_strided_slice %3 {offsets = [0, 384], sizes = [4, 384], strides = [1, 1]} : vector<4x768xf32> to vector<4x384xf32>
    %6 = arith.mulf %4, %4 : vector<4x384xf32>
    %7 = arith.mulf %5, %5 : vector<4x384xf32>
    %8 = arith.addf %6, %7 : vector<4x384xf32>
    %9 = math.sqrt %8 : vector<4x384xf32>
    %10 = arith.truncf %9 : vector<4x384xf32> to vector<4x384xbf16>
    %c0_4 = arith.constant 0 : index
    %c0_5 = arith.constant 0 : index
    %11 = vector.load %arg3[%c0_4, %c0_5] : memref<384x256xbf16, #tpu.memory_space<vmem>>, vector<384x256xbf16>
    %cst_6 = arith.constant dense<0.000000e+00> : vector<4x256xf32>
    %12 = tpu.matmul %10, %11, %cst_6 {dimension_numbers = #tpu.dot_dimension_numbers<[1], [0], [0], [1], [0, 0, 1, 1], [], []>} : vector<4x384xbf16>, vector<384x256xbf16>, vector<4x256xf32> -> vector<4x256xf32>
    %c0_7 = arith.constant 0 : index
    %c0_8 = arith.constant 0 : index
    %13 = vector.load %arg4[%c0_7, %c0_8] : memref<384x256xbf16, #tpu.memory_space<vmem>>, vector<384x256xbf16>
    %cst_9 = arith.constant dense<0.000000e+00> : vector<4x256xf32>
    %14 = tpu.matmul %10, %13, %cst_9 {dimension_numbers = #tpu.dot_dimension_numbers<[1], [0], [0], [1], [0, 0, 1, 1], [], []>} : vector<4x384xbf16>, vector<384x256xbf16>, vector<4x256xf32> -> vector<4x256xf32>
    %15 = arith.mulf %12, %12 : vector<4x256xf32>
    %16 = arith.mulf %14, %14 : vector<4x256xf32>
    %17 = arith.addf %15, %16 : vector<4x256xf32>
    %18 = math.sqrt %17 : vector<4x256xf32>
    %19 = arith.truncf %18 : vector<4x256xf32> to vector<4x256xbf16>
    %c0_10 = arith.constant 0 : index
    %c0_11 = arith.constant 0 : index
    %20 = vector.load %arg5[%c0_10, %c0_11] : memref<256x24xbf16, #tpu.memory_space<vmem>>, vector<256x24xbf16>
    %cst_12 = arith.constant dense<0.000000e+00> : vector<4x24xf32>
    %21 = tpu.matmul %19, %20, %cst_12 {dimension_numbers = #tpu.dot_dimension_numbers<[1], [0], [0], [1], [0, 0, 1, 1], [], []>} : vector<4x256xbf16>, vector<256x24xbf16>, vector<4x24xf32> -> vector<4x24xf32>
    %22 = vector.extract_strided_slice %21 {offsets = [2, 0], sizes = [2, 24], strides = [1, 1]} : vector<4x24xf32> to vector<2x24xf32>
    %23 = vector.extract_strided_slice %21 {offsets = [0, 0], sizes = [2, 24], strides = [1, 1]} : vector<4x24xf32> to vector<2x24xf32>
    %24 = arith.subf %22, %23 : vector<2x24xf32>
    %25 = vector.extract_strided_slice %24 {offsets = [0, 0], sizes = [2, 8], strides = [1, 1]} : vector<2x24xf32> to vector<2x8xf32>
    %26 = vector.extract_strided_slice %24 {offsets = [0, 8], sizes = [2, 8], strides = [1, 1]} : vector<2x24xf32> to vector<2x8xf32>
    %27 = vector.extract_strided_slice %24 {offsets = [0, 16], sizes = [2, 8], strides = [1, 1]} : vector<2x24xf32> to vector<2x8xf32>
    %28 = tpu.concatenate %25, %26, %27 in 0 : vector<2x8xf32>, vector<2x8xf32>, vector<2x8xf32> -> vector<6x8xf32>
    %cst_13 = arith.constant dense<0.000000e+00> : vector<6x6xf32>
    %29 = tpu.matmul %28, %28, %cst_13 {dimension_numbers = #tpu.dot_dimension_numbers<[1], [1], [0], [0], [0, 0, 1, 0], [], []>} : vector<6x8xf32>, vector<6x8xf32>, vector<6x6xf32> -> vector<6x6xf32>
    %c0_14 = arith.constant 0 : index
    %c0_15 = arith.constant 0 : index
    %30 = vector.load %arg8[%c0_14, %c0_15] : memref<6x6xf32, #tpu.memory_space<vmem>>, vector<6x6xf32>
    %31 = arith.mulf %29, %30 : vector<6x6xf32>
    %c0_16 = arith.constant 0 : index
    %c0_17 = arith.constant 0 : index
    %32 = vector.load %arg6[%c0_16, %c0_17] : memref<2x6xf32, #tpu.memory_space<vmem>>, vector<2x6xf32>
    %c0_18 = arith.constant 0 : index
    %c0_19 = arith.constant 0 : index
    %33 = vector.load %arg7[%c0_18, %c0_19] : memref<6x2xf32, #tpu.memory_space<vmem>>, vector<6x2xf32>
    %34 = arith.mulf %31, %31 : vector<6x6xf32>
    %cst_20 = arith.constant dense<0.000000e+00> : vector<6xf32>
    %35 = vector.multi_reduction <add>, %34, %cst_20 [1] : vector<6x6xf32> to vector<6xf32>
    %36 = vector.shape_cast %35 : vector<6xf32> to vector<6x1xf32>
    %cst_21 = arith.constant dense<0.000000e+00> : vector<2x1xf32>
    %37 = tpu.matmul %32, %36, %cst_21 {dimension_numbers = #tpu.dot_dimension_numbers<[1], [0], [0], [1], [0, 0, 1, 1], [], []>} : vector<2x6xf32>, vector<6x1xf32>, vector<2x1xf32> -> vector<2x1xf32>
    %38 = math.sqrt %37 : vector<2x1xf32>
    %cst_22 = arith.constant 1.000000e-30 : f32
    %39 = vector.broadcast %cst_22 : f32 to vector<2x1xf32>
    %40 = arith.addf %38, %39 : vector<2x1xf32>
    %cst_23 = arith.constant 1.000000e+00 : f32
    %41 = vector.broadcast %cst_23 : f32 to vector<2x1xf32>
    %42 = arith.divf %41, %40 : vector<2x1xf32>
    %cst_24 = arith.constant dense<0.000000e+00> : vector<6x1xf32>
    %43 = tpu.matmul %33, %42, %cst_24 {dimension_numbers = #tpu.dot_dimension_numbers<[1], [0], [0], [1], [0, 0, 1, 1], [], []>} : vector<6x2xf32>, vector<2x1xf32>, vector<6x1xf32> -> vector<6x1xf32>
    %44 = vector.broadcast %43 : vector<6x1xf32> to vector<6x6xf32>
    %45 = arith.mulf %31, %44 : vector<6x6xf32>
    %cst_25 = arith.constant dense<0.000000e+00> : vector<6x6xf32>
    %46 = tpu.matmul %45, %45, %cst_25 {dimension_numbers = #tpu.dot_dimension_numbers<[1], [0], [0], [1], [0, 0, 1, 1], [], []>} : vector<6x6xf32>, vector<6x6xf32>, vector<6x6xf32> -> vector<6x6xf32>
    %cst_26 = arith.constant dense<0.000000e+00> : vector<6x6xf32>
    %47 = tpu.matmul %46, %46, %cst_26 {dimension_numbers = #tpu.dot_dimension_numbers<[1], [0], [0], [1], [0, 0, 1, 1], [], []>} : vector<6x6xf32>, vector<6x6xf32>, vector<6x6xf32> -> vector<6x6xf32>
    %cst_27 = arith.constant dense<0.000000e+00> : vector<6x6xf32>
    %48 = tpu.matmul %47, %47, %cst_27 {dimension_numbers = #tpu.dot_dimension_numbers<[1], [0], [0], [1], [0, 0, 1, 1], [], []>} : vector<6x6xf32>, vector<6x6xf32>, vector<6x6xf32> -> vector<6x6xf32>
    %49 = arith.mulf %48, %48 : vector<6x6xf32>
    %cst_28 = arith.constant dense<0.000000e+00> : vector<6xf32>
    %50 = vector.multi_reduction <add>, %49, %cst_28 [1] : vector<6x6xf32> to vector<6xf32>
    %51 = vector.shape_cast %50 : vector<6xf32> to vector<6x1xf32>
    %cst_29 = arith.constant dense<0.000000e+00> : vector<2x1xf32>
    %52 = tpu.matmul %32, %51, %cst_29 {dimension_numbers = #tpu.dot_dimension_numbers<[1], [0], [0], [1], [0, 0, 1, 1], [], []>} : vector<2x6xf32>, vector<6x1xf32>, vector<2x1xf32> -> vector<2x1xf32>
    %53 = math.sqrt %52 : vector<2x1xf32>
    %cst_30 = arith.constant 1.000000e-30 : f32
    %54 = vector.broadcast %cst_30 : f32 to vector<2x1xf32>
    %55 = arith.addf %53, %54 : vector<2x1xf32>
    %cst_31 = arith.constant 1.000000e+00 : f32
    %56 = vector.broadcast %cst_31 : f32 to vector<2x1xf32>
    %57 = arith.divf %56, %55 : vector<2x1xf32>
    %cst_32 = arith.constant dense<0.000000e+00> : vector<6x1xf32>
    %58 = tpu.matmul %33, %57, %cst_32 {dimension_numbers = #tpu.dot_dimension_numbers<[1], [0], [0], [1], [0, 0, 1, 1], [], []>} : vector<6x2xf32>, vector<2x1xf32>, vector<6x1xf32> -> vector<6x1xf32>
    %59 = vector.broadcast %58 : vector<6x1xf32> to vector<6x6xf32>
    %60 = arith.mulf %48, %59 : vector<6x6xf32>
    %cst_33 = arith.constant dense<0.000000e+00> : vector<6x6xf32>
    %61 = tpu.matmul %60, %60, %cst_33 {dimension_numbers = #tpu.dot_dimension_numbers<[1], [0], [0], [1], [0, 0, 1, 1], [], []>} : vector<6x6xf32>, vector<6x6xf32>, vector<6x6xf32> -> vector<6x6xf32>
    %cst_34 = arith.constant dense<0.000000e+00> : vector<6x6xf32>
    %62 = tpu.matmul %61, %61, %cst_34 {dimension_numbers = #tpu.dot_dimension_numbers<[1], [0], [0], [1], [0, 0, 1, 1], [], []>} : vector<6x6xf32>, vector<6x6xf32>, vector<6x6xf32> -> vector<6x6xf32>
    %cst_35 = arith.constant dense<0.000000e+00> : vector<6x6xf32>
    %63 = tpu.matmul %62, %62, %cst_35 {dimension_numbers = #tpu.dot_dimension_numbers<[1], [0], [0], [1], [0, 0, 1, 1], [], []>} : vector<6x6xf32>, vector<6x6xf32>, vector<6x6xf32> -> vector<6x6xf32>
    %64 = tpu.iota {dimensions = array<i32: 0>} : vector<6x6xi32>
    %65 = tpu.iota {dimensions = array<i32: 1>} : vector<6x6xi32>
    %66 = arith.cmpi eq, %64, %65 : vector<6x6xi32>
    %67 = arith.extui %66 : vector<6x6xi1> to vector<6x6xi32>
    %68 = arith.sitofp %67 : vector<6x6xi32> to vector<6x6xf32>
    %69 = arith.mulf %45, %63 : vector<6x6xf32>
    %cst_36 = arith.constant dense<0.000000e+00> : vector<6xf32>
    %70 = vector.multi_reduction <add>, %69, %cst_36 [1] : vector<6x6xf32> to vector<6xf32>
    %71 = vector.shape_cast %70 : vector<6xf32> to vector<6x1xf32>
    %cst_37 = arith.constant dense<0.000000e+00> : vector<2x1xf32>
    %72 = tpu.matmul %32, %71, %cst_37 {dimension_numbers = #tpu.dot_dimension_numbers<[1], [0], [0], [1], [0, 0, 1, 1], [], []>} : vector<2x6xf32>, vector<6x1xf32>, vector<2x1xf32> -> vector<2x1xf32>
    %73 = arith.mulf %63, %68 : vector<6x6xf32>
    %cst_38 = arith.constant dense<0.000000e+00> : vector<6xf32>
    %74 = vector.multi_reduction <add>, %73, %cst_38 [1] : vector<6x6xf32> to vector<6xf32>
    %75 = vector.shape_cast %74 : vector<6xf32> to vector<6x1xf32>
    %cst_39 = arith.constant dense<0.000000e+00> : vector<2x1xf32>
    %76 = tpu.matmul %32, %75, %cst_39 {dimension_numbers = #tpu.dot_dimension_numbers<[1], [0], [0], [1], [0, 0, 1, 1], [], []>} : vector<2x6xf32>, vector<6x1xf32>, vector<2x1xf32> -> vector<2x1xf32>
    %cst_40 = arith.constant 1.000000e-30 : f32
    %77 = vector.broadcast %cst_40 : f32 to vector<2x1xf32>
    %78 = arith.addf %76, %77 : vector<2x1xf32>
    %79 = arith.divf %72, %78 : vector<2x1xf32>
    %80 = arith.mulf %79, %38 : vector<2x1xf32>
    %cst_41 = arith.constant 0.000000e+00 : f32
    %81 = vector.broadcast %cst_41 : f32 to vector<2x1xf32>
    %82 = arith.maximumf %80, %81 : vector<2x1xf32>
    %83 = math.sqrt %82 : vector<2x1xf32>
    %c0_42 = arith.constant 0 : index
    %c0_43 = arith.constant 0 : index
    %84 = vector.load %arg9[%c0_42, %c0_43] : memref<2x1xf32, #tpu.memory_space<vmem>>, vector<2x1xf32>
    tpu.vector_store %arg9[%c0_42, %c0_43], %83 {strides = array<i32>} : memref<2x1xf32, #tpu.memory_space<vmem>>, vector<2x1xf32>,
    return
  }
  func.func @transform_0(%arg0: i32) -> (i32, i32, i32) {
    %c0_i32 = arith.constant 0 : i32
    %c0_i32_0 = arith.constant 0 : i32
    %c0_i32_1 = arith.constant 0 : i32
    return %arg0, %c0_i32, %c0_i32_0 : i32, i32, i32
  }
  func.func @transform_1(%arg0: i32) -> (i32, i32) {
    %c0_i32 = arith.constant 0 : i32
    %c0_i32_0 = arith.constant 0 : i32
    %c0_i32_1 = arith.constant 0 : i32
    return %c0_i32, %c0_i32_0 : i32, i32
  }
  func.func @transform_2(%arg0: i32) -> (i32, i32) {
    %c0_i32 = arith.constant 0 : i32
    %c0_i32_0 = arith.constant 0 : i32
    %c0_i32_1 = arith.constant 0 : i32
    return %c0_i32, %c0_i32_0 : i32, i32
  }
  func.func @transform_3(%arg0: i32) -> (i32, i32) {
    %c0_i32 = arith.constant 0 : i32
    %c0_i32_0 = arith.constant 0 : i32
    %c0_i32_1 = arith.constant 0 : i32
    return %c0_i32, %c0_i32_0 : i32, i32
  }
  func.func @transform_4(%arg0: i32) -> (i32, i32) {
    %c0_i32 = arith.constant 0 : i32
    %c0_i32_0 = arith.constant 0 : i32
    %c0_i32_1 = arith.constant 0 : i32
    return %c0_i32, %c0_i32_0 : i32, i32
  }
  func.func @transform_5(%arg0: i32) -> (i32, i32) {
    %c0_i32 = arith.constant 0 : i32
    %c0_i32_0 = arith.constant 0 : i32
    %c0_i32_1 = arith.constant 0 : i32
    return %c0_i32, %c0_i32_0 : i32, i32
  }
  func.func @transform_6(%arg0: i32) -> (i32, i32) {
    %c0_i32 = arith.constant 0 : i32
    %c0_i32_0 = arith.constant 0 : i32
    %c0_i32_1 = arith.constant 0 : i32
    return %c0_i32, %c0_i32_0 : i32, i32
  }
  func.func @transform_7(%arg0: i32) -> (i32, i32) {
    %c0_i32 = arith.constant 0 : i32
    %c0_i32_0 = arith.constant 0 : i32
    %c0_i32_1 = arith.constant 0 : i32
    return %c0_i32, %c0_i32_0 : i32, i32
  }
  func.func @transform_8(%arg0: i32) -> (i32, i32) {
    %c0_i32 = arith.constant 0 : i32
    %c0_i32_0 = arith.constant 0 : i32
    return %arg0, %c0_i32 : i32, i32
  }
}

</mosaic_0001>

<bundles_post_ra>
// kernel: _scrapl_path_distance.1
= control target key start
LH: loop header
LB: loop body
LE: loop exit
PB: predicated region body
PF: predicated region fallthrough
CT: control target
= control target key end

     0   :  { %13 = vsyncpa [#allocation3], 0  ;;  %s3677_s0 = inlined_call_operand.vmem [shape: bf16[1,4,256], index: 0, kind: input, shape index: {}]   ;;  %s3678_s1 = inlined_call_operand.hbm [shape: bf16[256,768], index: 1, kind: input, shape index: {}]   ;;  %s3679_s2 = inlined_call_operand.hbm [shape: bf16[384,256], index: 2, kind: input, shape index: {}]   ;;  %s3680_s3 = inlined_call_operand.hbm [shape: bf16[384,256], index: 3, kind: input, shape index: {}]   ;;  %s3681_s4 = inlined_call_operand.vmem [shape: bf16[256,24], index: 4, kind: input, shape index: {}]   ;;  %s3682_s5 = inlined_call_operand.vmem [shape: f32[2,6], index: 5, kind: input, shape index: {}]   ;;  %s3683_s6 = inlined_call_operand.vmem [shape: f32[6,2], index: 6, kind: input, shape index: {}]   ;;  %s3684_s7 = inlined_call_operand.vmem [shape: f32[6,6], index: 7, kind: input, shape index: {}]   ;;  %s3685_s8 = inlined_call_operand.vmem [shape: f32[2,1], index: 8, kind: output, shape index: {}]  }
   0x1   :  { %14 = vsyncpa [#allocation5], 0  ;;  %s34_s29 = sshll.u32 %s3679_s2, 4  ;;  %s3432_s30 = smov [#allocation4]   ;;  %s35_s29 = int_to_ptr.hbm [resolvable:$true] %s34_s29 }
   0x2   :  { %s36_s9 = sshll.u32 %s3432_s30, 4  ;;  %s21_s12 = sshll.u32 %s3678_s1, 4  ;;  %s37_s9 = int_to_ptr.vmem [resolvable:$true] %s36_s9  ;;  %s22_s12 = int_to_ptr.hbm [resolvable:$true] %s21_s12 }
   0x3   :  { %s3433_s13 = smov 128   ;;  %s3434_s14 = smov 8  }
   0x4   :  { %42 = dma.hbm_to_vmem [thread:$0]  %s35_s29, 6144, %s37_s9, [#allocation5], %s3433_s13, %s3433_s13, %s3434_s14  }
   0x5   :  { %s3435_s15 = smov [#allocation2]   ;;  %s3436_s17 = smov 384  }
   0x6   :  { %s23_s16 = sshll.u32 %s3435_s15, 4  ;;  %s3437_s18 = smov 24   ;;  %s24_s16 = int_to_ptr.vmem [resolvable:$true] %s23_s16 }
   0x7   :  { %29 = dma.hbm_to_vmem [thread:$0]  %s22_s12, 12288, %s24_s16, [#allocation3], %s3436_s17, %s3436_s17, %s3437_s18  }
   0x8   :  { %s47_s20 = sshll.u32 %s3680_s3, 4  ;;  %s3438_s21 = smov [#allocation6]   ;;  %s48_s20 = int_to_ptr.hbm [resolvable:$true] %s47_s20 }
   0x9   :  { %s49_s22 = sshll.u32 %s3438_s21, 4  ;;  %s50_s22 = int_to_ptr.vmem [resolvable:$true] %s49_s22 }
   0xa   :  { %55 = dma.hbm_to_vmem [thread:$0]  %s48_s20, 6144, %s50_s22, [#allocation5], %s3433_s13, %s3433_s13, %s3434_s14  }
   0xb   :  { %3428 = dma.done.wait [#allocation3], 12288  }
   0xc   :  { %3429 = vsyncadd [#allocation3], 4294955008 }
   0xd   :  { %3430 = dma.done.wait [#allocation5], 12288  }
   0xe   :  { %3431 = vsyncadd [#allocation5], 4294955008  ;;  %v2423_v0 = vld [vmem:[#allocation2 + $0x150] sm:$0xf]  ;;  %v3157_v1 = vld [vmem:[#allocation2 + $0x164] sm:$0xf0] }
   0xf   :  { %v2615_v2 = vld [vmem:[#allocation2 + $0x2d0] sm:$0xf]  ;;  %v2424_v3 = vor.u32 %v3157_v1, %v2423_v0  ;;  %v3205_v4 = vld [vmem:[#allocation2 + $0x2e4] sm:$0xf0]  ;;  %v3154_v5 = vld [vmem:[#allocation2 + $0x154] sm:$0xf] }
  0x10   :  { %v2425_v6 = vld [vmem:[#allocation2 + $0x168] sm:$0xf0]  ;;  %v2616_v7 = vor.u32 %v3205_v4, %v2615_v2  ;;  %v3202_v9 = vld [vmem:[#allocation2 + $0x2d4] sm:$0xf]  ;;  %v2399_v11 = vld [vmem:[#allocation2 + $0x120] sm:$0xf] }
  0x11   :  { %v2428_v8 = vor.u32 %v3154_v5, %v2425_v6  ;;  %v2617_v10 = vld [vmem:[#allocation2 + $0x2e8] sm:$0xf0]  ;;  %659 = vmatpush.bf16.msra.mxu0 %v2424_v3  ;;  %v3151_v13 = vld [vmem:[#allocation2 + $0x134] sm:$0xf0]  ;;  %v2591_v14 = vld [vmem:[#allocation2 + $0x2a0] sm:$0xf] }
  0x12   :  { %v2620_v12 = vor.u32 %v3202_v9, %v2617_v10  ;;  %v3199_v15 = vld [vmem:[#allocation2 + $0x2b4] sm:$0xf0]  ;;  %672 = vmatpush.bf16.msra.mxu1 %v2616_v7  ;;  %v2400_v16 = vor.u32 %v3151_v13, %v2399_v11  ;;  %v3148_v18 = vld [vmem:[#allocation2 + $0x124] sm:$0xf]  ;;  %v2401_v19 = vld [vmem:[#allocation2 + $0x138] sm:$0xf0] }
  0x13   :  { %685 = vmatpush.bf16.msra.mxu2 %v2428_v8  ;;  %v2592_v17 = vor.u32 %v3199_v15, %v2591_v14  ;;  %v3196_v20 = vld [vmem:[#allocation2 + $0x2a4] sm:$0xf]  ;;  %v2404_v21 = vor.u32 %v3148_v18, %v2401_v19  ;;  %v2593_v22 = vld [vmem:[#allocation2 + $0x2b8] sm:$0xf0]  ;;  %v2375_v23 = vld [vmem:[#allocation2 + $0xf0] sm:$0xf] }
  0x14   :  { %698 = vmatpush.bf16.msra.mxu3 %v2620_v12  ;;  %v3145_v24 = vld [vmem:[#allocation2 + $0x104] sm:$0xf0]  ;;  %v2596_v25 = vor.u32 %v3196_v20, %v2593_v22  ;;  %v2567_v26 = vld [vmem:[#allocation2 + $0x270] sm:$0xf]  ;;  %v3142_v28 = vld [vmem:[#allocation2 + $0xf4] sm:$0xf] }
  0x15   :  { %v3193_v27 = vld [vmem:[#allocation2 + $0x284] sm:$0xf0]  ;;  %660 = vmatpush.bf16.msra.mxu0 %v2400_v16  ;;  %v2376_v29 = vor.u32 %v3145_v24, %v2375_v23  ;;  %v2377_v30 = vld [vmem:[#allocation2 + $0x108] sm:$0xf0]  ;;  %v3190_v31 = vld [vmem:[#allocation2 + $0x274] sm:$0xf] }
  0x16   :  { %v2569_v32 = vld [vmem:[#allocation2 + $0x288] sm:$0xf0]  ;;  %673 = vmatpush.bf16.msra.mxu1 %v2592_v17  ;;  %v2568_v33 = vor.u32 %v3193_v27, %v2567_v26  ;;  %v2380_v34 = vor.u32 %v3142_v28, %v2377_v30  ;;  %v2351_v35 = vld [vmem:[#allocation2 + $0xc0] sm:$0xf]  ;;  %v3139_v36 = vld [vmem:[#allocation2 + $0xd4] sm:$0xf0] }
  0x17   :  { %686 = vmatpush.bf16.msra.mxu2 %v2404_v21  ;;  %v2543_v37 = vld [vmem:[#allocation2 + $0x240] sm:$0xf]  ;;  %v2572_v38 = vor.u32 %v3190_v31, %v2569_v32  ;;  %v3187_v39 = vld [vmem:[#allocation2 + $0x254] sm:$0xf0]  ;;  %v3136_v40 = vld [vmem:[#allocation2 + $0xc4] sm:$0xf]  ;;  %v2352_v44 = vor.u32 %v3139_v36, %v2351_v35 }
  0x18   :  { %699 = vmatpush.bf16.msra.mxu3 %v2596_v25  ;;  %v2353_v41 = vld [vmem:[#allocation2 + $0xd8] sm:$0xf0]  ;;  %v3184_v42 = vld [vmem:[#allocation2 + $0x244] sm:$0xf]  ;;  %v2544_v45 = vor.u32 %v3187_v39, %v2543_v37  ;;  %v2327_v47 = vld [vmem:[#allocation2 + $0x90] sm:$0xf] }
  0x19   :  { %v2545_v43 = vld [vmem:[#allocation2 + $0x258] sm:$0xf0]  ;;  %661 = vmatpush.bf16.msra.mxu0 %v2376_v29  ;;  %v2356_v46 = vor.u32 %v3136_v40, %v2353_v41  ;;  %v3133_v48 = vld [vmem:[#allocation2 + $0xa4] sm:$0xf0]  ;;  %v2519_v49 = vld [vmem:[#allocation2 + $0x210] sm:$0xf] }
  0x1a   :  { %674 = vmatpush.bf16.msra.mxu1 %v2568_v33  ;;  %v2548_v50 = vor.u32 %v3184_v42, %v2545_v43  ;;  %v3181_v51 = vld [vmem:[#allocation2 + $0x224] sm:$0xf0]  ;;  %v3130_v52 = vld [vmem:[#allocation2 + $0x94] sm:$0xf]  ;;  %v2329_v53 = vld [vmem:[#allocation2 + $0xa8] sm:$0xf0]  ;;  %v2328_v56 = vor.u32 %v3133_v48, %v2327_v47 }
  0x1b   :  { %687 = vmatpush.bf16.msra.mxu2 %v2380_v34  ;;  %v3178_v54 = vld [vmem:[#allocation2 + $0x214] sm:$0xf]  ;;  %v2521_v55 = vld [vmem:[#allocation2 + $0x228] sm:$0xf0]  ;;  %v2520_v57 = vor.u32 %v3181_v51, %v2519_v49  ;;  %v2332_v58 = vor.u32 %v3130_v52, %v2329_v53  ;;  %v2303_v59 = vld [vmem:[#allocation2 + $0x60] sm:$0xf] }
  0x1c   :  { %700 = vmatpush.bf16.msra.mxu3 %v2572_v38  ;;  %v3127_v60 = vld [vmem:[#allocation2 + $0x74] sm:$0xf0]  ;;  %v2495_v61 = vld [vmem:[#allocation2 + $0x1e0] sm:$0xf]  ;;  %v2524_v62 = vor.u32 %v3178_v54, %v2521_v55  ;;  %v3124_v0 = vld [vmem:[#allocation2 + $0x64] sm:$0xf] }
  0x1d   :  { %662 = vmatpush.bf16.msra.mxu0 %v2352_v44  ;;  %v3175_v63 = vld [vmem:[#allocation2 + $0x1f4] sm:$0xf0]  ;;  %v2305_v1 = vld [vmem:[#allocation2 + $0x78] sm:$0xf0]  ;;  %v3172_v2 = vld [vmem:[#allocation2 + $0x1e4] sm:$0xf]  ;;  %v2304_v4 = vor.u32 %v3127_v60, %v2303_v59 }
  0x1e   :  { %675 = vmatpush.bf16.msra.mxu1 %v2544_v45  ;;  %v2497_v3 = vld [vmem:[#allocation2 + $0x1f8] sm:$0xf0]  ;;  %v2496_v5 = vor.u32 %v3175_v63, %v2495_v61  ;;  %v2308_v6 = vor.u32 %v3124_v0, %v2305_v1  ;;  %v2279_v7 = vld [vmem:[#allocation2 + $0x30] sm:$0xf]  ;;  %v3121_v8 = vld [vmem:[#allocation2 + $0x44] sm:$0xf0] }
  0x1f   :  { %688 = vmatpush.bf16.msra.mxu2 %v2356_v46  ;;  %v2471_v9 = vld [vmem:[#allocation2 + $0x1b0] sm:$0xf]  ;;  %v2500_v10 = vor.u32 %v3172_v2, %v2497_v3  ;;  %v3169_v11 = vld [vmem:[#allocation2 + $0x1c4] sm:$0xf0]  ;;  %v3118_v12 = vld [vmem:[#allocation2 + $0x34] sm:$0xf]  ;;  %v2280_v16 = vor.u32 %v3121_v8, %v2279_v7 }
  0x20   :  { %701 = vmatpush.bf16.msra.mxu3 %v2548_v50  ;;  %v2281_v13 = vld [vmem:[#allocation2 + $0x48] sm:$0xf0]  ;;  %v3166_v14 = vld [vmem:[#allocation2 + $0x1b4] sm:$0xf]  ;;  %v2255_v17 = vld [vmem:[#allocation2] sm:$0xf]  ;;  %v2472_v19 = vor.u32 %v3169_v11, %v2471_v9 }
  0x21   :  { %663 = vmatpush.bf16.msra.mxu0 %v2328_v56  ;;  %v2473_v15 = vld [vmem:[#allocation2 + $0x1c8] sm:$0xf0]  ;;  %v3115_v18 = vld [vmem:[#allocation2 + $0x14] sm:$0xf0]  ;;  %v2284_v20 = vor.u32 %v3118_v12, %v2281_v13  ;;  %v2447_v21 = vld [vmem:[#allocation2 + $0x180] sm:$0xf] }
  0x22   :  { %676 = vmatpush.bf16.msra.mxu1 %v2520_v57  ;;  %v3163_v22 = vld [vmem:[#allocation2 + $0x194] sm:$0xf0]  ;;  %v3112_v23 = vld [vmem:[#allocation2 + $0x4] sm:$0xf]  ;;  %v2476_v24 = vor.u32 %v3166_v14, %v2473_v15  ;;  %v2257_v25 = vld [vmem:[#allocation2 + $0x18] sm:$0xf0]  ;;  %v2256_v31 = vor.u32 %v3115_v18, %v2255_v17 }
  0x23   :  { %689 = vmatpush.bf16.msra.mxu2 %v2332_v58  ;;  %v3160_v26 = vld [vmem:[#allocation2 + $0x184] sm:$0xf]  ;;  %v2449_v27 = vld [vmem:[#allocation2 + $0x198] sm:$0xf0]  ;;  %v2431_v28 = vld [vmem:[#allocation2 + $0x158] sm:$0xf]  ;;  %v2448_v35 = vor.u32 %v3163_v22, %v2447_v21  ;;  %v2260_v36 = vor.u32 %v3112_v23, %v2257_v25 }
  0x24   :  { %702 = vmatpush.bf16.msra.mxu3 %v2524_v62  ;;  %v3158_v29 = vld [vmem:[#allocation2 + $0x16c] sm:$0xf0]  ;;  %v2623_v30 = vld [vmem:[#allocation2 + $0x2d8] sm:$0xf]  ;;  %v3155_v33 = vld [vmem:[#allocation2 + $0x15c] sm:$0xf]  ;;  %v2452_v39 = vor.u32 %v3160_v26, %v2449_v27 }
  0x25   :  { %664 = vmatpush.bf16.msra.mxu0 %v2304_v4  ;;  %v3206_v32 = vld [vmem:[#allocation2 + $0x2ec] sm:$0xf0]  ;;  %v2433_v34 = vld [vmem:[#allocation2 + $0x170] sm:$0xf0]  ;;  %v3203_v37 = vld [vmem:[#allocation2 + $0x2dc] sm:$0xf]  ;;  %v2432_v40 = vor.u32 %v3158_v29, %v2431_v28 }
  0x26   :  { %677 = vmatpush.bf16.msra.mxu1 %v2496_v5  ;;  %v2625_v38 = vld [vmem:[#allocation2 + $0x2f0] sm:$0xf0]  ;;  %v2624_v41 = vor.u32 %v3206_v32, %v2623_v30  ;;  %v2436_v42 = vor.u32 %v3155_v33, %v2433_v34  ;;  %v2407_v43 = vld [vmem:[#allocation2 + $0x128] sm:$0xf]  ;;  %v3152_v44 = vld [vmem:[#allocation2 + $0x13c] sm:$0xf0] }
  0x27   :  { %690 = vmatpush.bf16.msra.mxu2 %v2308_v6  ;;  %v2599_v45 = vld [vmem:[#allocation2 + $0x2a8] sm:$0xf]  ;;  %v2628_v46 = vor.u32 %v3203_v37, %v2625_v38  ;;  %v3200_v47 = vld [vmem:[#allocation2 + $0x2bc] sm:$0xf0]  ;;  %v3149_v48 = vld [vmem:[#allocation2 + $0x12c] sm:$0xf]  ;;  %v2408_v53 = vor.u32 %v3152_v44, %v2407_v43 }
  0x28   :  { %703 = vmatpush.bf16.msra.mxu3 %v2500_v10  ;;  %v2409_v49 = vld [vmem:[#allocation2 + $0x140] sm:$0xf0]  ;;  %v3197_v50 = vld [vmem:[#allocation2 + $0x2ac] sm:$0xf]  ;;  %v76_v52 = vld [vmem:[%s3677_s0] sm:$0xf]  ;;  %v2600_v54 = vor.u32 %v3200_v47, %v2599_v45 }
  0x29   :  { %665 = vmatpush.bf16.msra.mxu0 %v2280_v16  ;;  %v2601_v51 = vld [vmem:[#allocation2 + $0x2c0] sm:$0xf0]  ;;  %174 = vst [vmem:[#allocation1] ss:$4 sm:$0xff] %v76_v52  ;;  %v2412_v55 = vor.u32 %v3149_v48, %v2409_v49  ;;  %v2383_v56 = vld [vmem:[#allocation2 + $0xf8] sm:$0xf] }
  0x2a   :  { %678 = vmatpush.bf16.msra.mxu1 %v2472_v19  ;;  %v3146_v57 = vld [vmem:[#allocation2 + $0x10c] sm:$0xf0]  ;;  %v2575_v58 = vld [vmem:[#allocation2 + $0x278] sm:$0xf]  ;;  %v2604_v59 = vor.u32 %v3197_v50, %v2601_v51  ;;  %v3143_v61 = vld [vmem:[#allocation2 + $0xfc] sm:$0xf] }
  0x2b   :  { %691 = vmatpush.bf16.msra.mxu2 %v2284_v20  ;;  %v3194_v60 = vld [vmem:[#allocation2 + $0x28c] sm:$0xf0]  ;;  %v2385_v62 = vld [vmem:[#allocation2 + $0x110] sm:$0xf0]  ;;  %v3191_v63 = vld [vmem:[#allocation2 + $0x27c] sm:$0xf]  ;;  %v2384_v1 = vor.u32 %v3146_v57, %v2383_v56 }
  0x2c   :  { %704 = vmatpush.bf16.msra.mxu3 %v2476_v24  ;;  %v2577_v0 = vld [vmem:[#allocation2 + $0x290] sm:$0xf0]  ;;  %v2359_v2 = vld [vmem:[#allocation2 + $0xc8] sm:$0xf]  ;;  %v2576_v3 = vor.u32 %v3194_v60, %v2575_v58  ;;  %v2388_v4 = vor.u32 %v3143_v61, %v2385_v62  ;;  %v3140_v5 = vld [vmem:[#allocation2 + $0xdc] sm:$0xf0] }
  0x2d   :  { %666 = vmatpush.bf16.msra.mxu0 %v2256_v31  ;;  %v2551_v6 = vld [vmem:[#allocation2 + $0x248] sm:$0xf]  ;;  %v3188_v7 = vld [vmem:[#allocation2 + $0x25c] sm:$0xf0]  ;;  %v2580_v8 = vor.u32 %v3191_v63, %v2577_v0  ;;  %v3137_v9 = vld [vmem:[#allocation2 + $0xcc] sm:$0xf]  ;;  %v2360_v14 = vor.u32 %v3140_v5, %v2359_v2 }
  0x2e   :  { %679 = vmatpush.bf16.msra.mxu1 %v2448_v35  ;;  %v2361_v10 = vld [vmem:[#allocation2 + $0xe0] sm:$0xf0]  ;;  %v3185_v11 = vld [vmem:[#allocation2 + $0x24c] sm:$0xf]  ;;  %v2552_v16 = vor.u32 %v3188_v7, %v2551_v6  ;;  %v2335_v18 = vld [vmem:[#allocation2 + $0x98] sm:$0xf] }
  0x2f   :  { %692 = vmatpush.bf16.msra.mxu2 %v2260_v36  ;;  %v2553_v12 = vld [vmem:[#allocation2 + $0x260] sm:$0xf0]  ;;  %v2364_v17 = vor.u32 %v3137_v9, %v2361_v10  ;;  %v3134_v19 = vld [vmem:[#allocation2 + $0xac] sm:$0xf0]  ;;  %v2527_v20 = vld [vmem:[#allocation2 + $0x218] sm:$0xf] }
  0x30   :  { %705 = vmatpush.bf16.msra.mxu3 %v2452_v39  ;;  %v3500_v13 = vld.sshfl [vmem:[#allocation1] sm:$0xff pattern:$0x73625140]  ;;  %v3503_v15 = vld.sshfl [vmem:[#allocation1 + $0x8] sm:$0xff pattern:$0x73625140]  ;;  %v2556_v21 = vor.u32 %v3185_v11, %v2553_v12  ;;  %v2336_v27 = vor.u32 %v3134_v19, %v2335_v18 }
  0x31   :  { %711 = vmatpush.bf16.msrb.mxu0 %v2432_v40  ;;  %v3182_v22 = vld [vmem:[#allocation2 + $0x22c] sm:$0xf0]  ;;  %v3131_v23 = vld [vmem:[#allocation2 + $0x9c] sm:$0xf]  ;;  %v2337_v24 = vld [vmem:[#allocation2 + $0xb0] sm:$0xf0]  ;;  %680 = vmatmul.bf16.vlgmr.msra.gmra.mxu1 %v3503_v15 }
  0x32   :  { %724 = vmatpush.bf16.msrb.mxu1 %v2624_v41  ;;  %693 = vmatmul.bf16.vlgmr.msra.gmra.mxu2 %v3500_v13  ;;  %v3179_v25 = vld [vmem:[#allocation2 + $0x21c] sm:$0xf]  ;;  %v2529_v26 = vld [vmem:[#allocation2 + $0x230] sm:$0xf0]  ;;  %v2528_v28 = vor.u32 %v3182_v22, %v2527_v20  ;;  %v2340_v29 = vor.u32 %v3131_v23, %v2337_v24  ;;  %v2311_v30 = vld [vmem:[#allocation2 + $0x68] sm:$0xf] }
  0x33   :  { %737 = vmatpush.bf16.msrb.mxu2 %v2436_v42  ;;  %667 = vmatmul.bf16.vlgmr.msra.gmra.mxu0 %v3500_v13  ;;  %v3128_v31 = vld [vmem:[#allocation2 + $0x7c] sm:$0xf0]  ;;  %v2503_v32 = vld [vmem:[#allocation2 + $0x1e8] sm:$0xf]  ;;  %v2532_v33 = vor.u32 %v3179_v25, %v2529_v26  ;;  %v3125_v35 = vld [vmem:[#allocation2 + $0x6c] sm:$0xf] }
  0x34   :  { %750 = vmatpush.bf16.msrb.mxu3 %v2628_v46  ;;  %v3176_v34 = vld [vmem:[#allocation2 + $0x1fc] sm:$0xf0]  ;;  %v2313_v36 = vld [vmem:[#allocation2 + $0x80] sm:$0xf0]  ;;  %v3173_v37 = vld [vmem:[#allocation2 + $0x1ec] sm:$0xf]  ;;  %v2312_v39 = vor.u32 %v3128_v31, %v2311_v30 }
  0x35   :  { %712 = vmatpush.bf16.msrb.mxu0 %v2408_v53  ;;  %706 = vmatmul.bf16.vlgmr.msra.gmra.mxu3 %v3503_v15  ;;  %v2505_v38 = vld [vmem:[#allocation2 + $0x200] sm:$0xf0]  ;;  %v2504_v40 = vor.u32 %v3176_v34, %v2503_v32  ;;  %v2316_v41 = vor.u32 %v3125_v35, %v2313_v36  ;;  %v2287_v42 = vld [vmem:[#allocation2 + $0x38] sm:$0xf]  ;;  %v3122_v43 = vld [vmem:[#allocation2 + $0x4c] sm:$0xf0] }
  0x36   :  { %725 = vmatpush.bf16.msrb.mxu1 %v2600_v54  ;;  %v2479_v44 = vld [vmem:[#allocation2 + $0x1b8] sm:$0xf]  ;;  %v2508_v45 = vor.u32 %v3173_v37, %v2505_v38  ;;  %v3170_v46 = vld [vmem:[#allocation2 + $0x1cc] sm:$0xf0]  ;;  %v3119_v47 = vld [vmem:[#allocation2 + $0x3c] sm:$0xf]  ;;  %v2288_v51 = vor.u32 %v3122_v43, %v2287_v42 }
  0x37   :  { %738 = vmatpush.bf16.msrb.mxu2 %v2412_v55  ;;  %v2289_v48 = vld [vmem:[#allocation2 + $0x50] sm:$0xf0]  ;;  %v3167_v49 = vld [vmem:[#allocation2 + $0x1bc] sm:$0xf]  ;;  %v2263_v52 = vld [vmem:[#allocation2 + $0x8] sm:$0xf]  ;;  %v2480_v54 = vor.u32 %v3170_v46, %v2479_v44 }
  0x38   :  { %751 = vmatpush.bf16.msrb.mxu3 %v2604_v59  ;;  %v2481_v50 = vld [vmem:[#allocation2 + $0x1d0] sm:$0xf0]  ;;  %v3116_v53 = vld [vmem:[#allocation2 + $0x1c] sm:$0xf0]  ;;  %v2292_v55 = vor.u32 %v3119_v47, %v2289_v48  ;;  %v2455_v56 = vld [vmem:[#allocation2 + $0x188] sm:$0xf] }
  0x39   :  { %713 = vmatpush.bf16.msrb.mxu0 %v2384_v1  ;;  %v3164_v57 = vld [vmem:[#allocation2 + $0x19c] sm:$0xf0]  ;;  %v3113_v58 = vld [vmem:[#allocation2 + $0xc] sm:$0xf]  ;;  %v2484_v59 = vor.u32 %v3167_v49, %v2481_v50  ;;  %v2265_v60 = vld [vmem:[#allocation2 + $0x20] sm:$0xf0]  ;;  %v2264_v2 = vor.u32 %v3116_v53, %v2263_v52 }
  0x3a   :  { %726 = vmatpush.bf16.msrb.mxu1 %v2576_v3  ;;  %v3161_v61 = vld [vmem:[#allocation2 + $0x18c] sm:$0xf]  ;;  %v2457_v62 = vld [vmem:[#allocation2 + $0x1a0] sm:$0xf0]  ;;  %v2439_v63 = vld [vmem:[#allocation2 + $0x160] sm:$0xf]  ;;  %v2456_v6 = vor.u32 %v3164_v57, %v2455_v56  ;;  %v2268_v7 = vor.u32 %v3113_v58, %v2265_v60 }
  0x3b   :  { %739 = vmatpush.bf16.msrb.mxu2 %v2388_v4  ;;  %v3159_v0 = vld [vmem:[#allocation2 + $0x174] sm:$0xf0]  ;;  %v2631_v1 = vld [vmem:[#allocation2 + $0x2e0] sm:$0xf]  ;;  %v3156_v4 = vld [vmem:[#allocation2 + $0x164] sm:$0xf]  ;;  %v2460_v10 = vor.u32 %v3161_v61, %v2457_v62 }
  0x3c   :  { %752 = vmatpush.bf16.msrb.mxu3 %v2580_v8  ;;  %v3207_v3 = vld [vmem:[#allocation2 + $0x2f4] sm:$0xf0]  ;;  %v2441_v5 = vld [vmem:[#allocation2 + $0x178] sm:$0xf0]  ;;  %v3204_v8 = vld [vmem:[#allocation2 + $0x2e4] sm:$0xf]  ;;  %v2440_v11 = vor.u32 %v3159_v0, %v2439_v63 }
  0x3d   :  { %714 = vmatpush.bf16.msrb.mxu0 %v2360_v14  ;;  %v2633_v9 = vld [vmem:[#allocation2 + $0x2f8] sm:$0xf0]  ;;  %v2632_v12 = vor.u32 %v3207_v3, %v2631_v1  ;;  %v2444_v14 = vor.u32 %v3156_v4, %v2441_v5  ;;  %v2607_v18 = vld [vmem:[#allocation2 + $0x2b0] sm:$0xf]  ;;  %v3201_v20 = vld [vmem:[#allocation2 + $0x2c4] sm:$0xf0] }
  0x3e   :  { %727 = vmatpush.bf16.msrb.mxu1 %v2552_v16  ;;  %v2415_v16 = vld [vmem:[#allocation2 + $0x130] sm:$0xf]  ;;  %v2636_v19 = vor.u32 %v3204_v8, %v2633_v9  ;;  %v2417_v22 = vld [vmem:[#allocation2 + $0x148] sm:$0xf0]  ;;  %v3198_v23 = vld [vmem:[#allocation2 + $0x2b4] sm:$0xf]  ;;  %v2608_v26 = vor.u32 %v3201_v20, %v2607_v18 }
  0x3f   :  { %740 = vmatpush.bf16.msrb.mxu2 %v2364_v17  ;;  %v3153_v17 = vld [vmem:[#allocation2 + $0x144] sm:$0xf0]  ;;  %v2609_v24 = vld [vmem:[#allocation2 + $0x2c8] sm:$0xf0]  ;;  %v2583_v30 = vld [vmem:[#allocation2 + $0x280] sm:$0xf] }
  0x40   :  { %753 = vmatpush.bf16.msrb.mxu3 %v2556_v21  ;;  %v3150_v21 = vld [vmem:[#allocation2 + $0x134] sm:$0xf]  ;;  %v2416_v25 = vor.u32 %v3153_v17, %v2415_v16  ;;  %v2612_v31 = vor.u32 %v3198_v23, %v2609_v24  ;;  %v3195_v32 = vld [vmem:[#allocation2 + $0x294] sm:$0xf0]  ;;  %v2393_v34 = vld [vmem:[#allocation2 + $0x118] sm:$0xf0] }
  0x41   :  { %715 = vmatpush.bf16.msrb.mxu0 %v2336_v27  ;;  %v2420_v27 = vor.u32 %v3150_v21, %v2417_v22  ;;  %v3192_v35 = vld [vmem:[#allocation2 + $0x284] sm:$0xf]  ;;  %v2585_v36 = vld [vmem:[#allocation2 + $0x298] sm:$0xf0]  ;;  %v2584_v38 = vor.u32 %v3195_v32, %v2583_v30  ;;  %v2559_v42 = vld [vmem:[#allocation2 + $0x250] sm:$0xf] }
  0x42   :  { %728 = vmatpush.bf16.msrb.mxu1 %v2528_v28  ;;  %v2391_v28 = vld [vmem:[#allocation2 + $0x100] sm:$0xf]  ;;  %v2588_v43 = vor.u32 %v3192_v35, %v2585_v36  ;;  %v3189_v44 = vld [vmem:[#allocation2 + $0x264] sm:$0xf0]  ;;  %v2369_v46 = vld [vmem:[#allocation2 + $0xe8] sm:$0xf0] }
  0x43   :  { %741 = vmatpush.bf16.msrb.mxu2 %v2340_v29  ;;  %v3147_v29 = vld [vmem:[#allocation2 + $0x114] sm:$0xf0]  ;;  %v3186_v47 = vld [vmem:[#allocation2 + $0x254] sm:$0xf]  ;;  %v2561_v48 = vld [vmem:[#allocation2 + $0x268] sm:$0xf0]  ;;  %v2560_v50 = vor.u32 %v3189_v44, %v2559_v42 }
  0x44   :  { %754 = vmatpush.bf16.msrb.mxu3 %v2532_v33  ;;  %v3144_v33 = vld [vmem:[#allocation2 + $0x104] sm:$0xf]  ;;  %v2392_v37 = vor.u32 %v3147_v29, %v2391_v28  ;;  %v2343_v52 = vld [vmem:[#allocation2 + $0xa0] sm:$0xf]  ;;  %v3135_v53 = vld [vmem:[#allocation2 + $0xb4] sm:$0xf0] }
  0x45   :  { %716 = vmatpush.bf16.msrb.mxu0 %v2312_v39  ;;  %v2396_v39 = vor.u32 %v3144_v33, %v2393_v34  ;;  %v3183_v56 = vld [vmem:[#allocation2 + $0x234] sm:$0xf0]  ;;  %v3132_v57 = vld [vmem:[#allocation2 + $0xa4] sm:$0xf]  ;;  %v2345_v58 = vld [vmem:[#allocation2 + $0xb8] sm:$0xf0]  ;;  %v2344_v61 = vor.u32 %v3135_v53, %v2343_v52 }
  0x46   :  { %729 = vmatpush.bf16.msrb.mxu1 %v2504_v40  ;;  %v2367_v40 = vld [vmem:[#allocation2 + $0xd0] sm:$0xf]  ;;  %v2537_v60 = vld [vmem:[#allocation2 + $0x238] sm:$0xf0]  ;;  %v2348_v63 = vor.u32 %v3132_v57, %v2345_v58  ;;  %v3129_v1 = vld [vmem:[#allocation2 + $0x84] sm:$0xf0] }
  0x47   :  { %742 = vmatpush.bf16.msrb.mxu2 %v2316_v41  ;;  %v3141_v41 = vld [vmem:[#allocation2 + $0xe4] sm:$0xf0]  ;;  %v2319_v0 = vld [vmem:[#allocation2 + $0x70] sm:$0xf]  ;;  %v3126_v5 = vld [vmem:[#allocation2 + $0x74] sm:$0xf] }
  0x48   :  { %755 = vmatpush.bf16.msrb.mxu3 %v2508_v45  ;;  %v3138_v45 = vld [vmem:[#allocation2 + $0xd4] sm:$0xf]  ;;  %v2368_v49 = vor.u32 %v3141_v41, %v2367_v40  ;;  %v3177_v4 = vld [vmem:[#allocation2 + $0x204] sm:$0xf0]  ;;  %v2513_v8 = vld [vmem:[#allocation2 + $0x208] sm:$0xf0]  ;;  %v2320_v9 = vor.u32 %v3129_v1, %v2319_v0 }
  0x49   :  { %717 = vmatpush.bf16.msrb.mxu0 %v2288_v51  ;;  %v2372_v51 = vor.u32 %v3138_v45, %v2369_v46  ;;  %v2487_v16 = vld [vmem:[#allocation2 + $0x1c0] sm:$0xf]  ;;  %v3171_v18 = vld [vmem:[#allocation2 + $0x1d4] sm:$0xf0]  ;;  %v2297_v20 = vld [vmem:[#allocation2 + $0x58] sm:$0xf0] }
  0x4a   :  { %730 = vmatpush.bf16.msrb.mxu1 %v2480_v54  ;;  %v2535_v54 = vld [vmem:[#allocation2 + $0x220] sm:$0xf]  ;;  %v3168_v21 = vld [vmem:[#allocation2 + $0x1c4] sm:$0xf]  ;;  %v2489_v22 = vld [vmem:[#allocation2 + $0x1d8] sm:$0xf0] }
  0x4b   :  { %743 = vmatpush.bf16.msrb.mxu2 %v2292_v55  ;;  %v2564_v55 = vor.u32 %v3186_v47, %v2561_v48  ;;  %v2536_v62 = vor.u32 %v3183_v56, %v2535_v54  ;;  %v2271_v24 = vld [vmem:[#allocation2 + $0x10] sm:$0xf]  ;;  %v3165_v29 = vld [vmem:[#allocation2 + $0x1a4] sm:$0xf0]  ;;  %v2492_v30 = vor.u32 %v3168_v21, %v2489_v22  ;;  %v2273_v32 = vld [vmem:[#allocation2 + $0x28] sm:$0xf0] }
  0x4c   :  { %756 = vmatpush.bf16.msrb.mxu3 %v2484_v59  ;;  %v3180_v59 = vld [vmem:[#allocation2 + $0x224] sm:$0xf]  ;;  %v2463_v28 = vld [vmem:[#allocation2 + $0x190] sm:$0xf]  ;;  %v3162_v33 = vld [vmem:[#allocation2 + $0x194] sm:$0xf] }
  0x4d   :  { %718 = vmatpush.bf16.msrb.mxu0 %v2264_v2  ;;  %v2511_v2 = vld [vmem:[#allocation2 + $0x1f0] sm:$0xf]  ;;  %v2540_v3 = vor.u32 %v3180_v59, %v2537_v60  ;;  %v2465_v34 = vld [vmem:[#allocation2 + $0x1a8] sm:$0xf0]  ;;  %v3223_v36 = vld [vmem:[#allocation4 + $0x74] sm:$0xf0]  ;;  %v2464_v40 = vor.u32 %v3165_v29, %v2463_v28 }
  0x4e   :  { %731 = vmatpush.bf16.msrb.mxu1 %v2456_v6  ;;  %v2321_v6 = vld [vmem:[#allocation2 + $0x88] sm:$0xf0]  ;;  %v2695_v35 = vld [vmem:[#allocation4 + $0x70] sm:$0xf]  ;;  %v2468_v42 = vor.u32 %v3162_v33, %v2465_v34  ;;  %v2687_v45 = vld [vmem:[#allocation4 + $0x60] sm:$0xf] }
  0x4f   :  { %744 = vmatpush.bf16.msrb.mxu2 %v2268_v7  ;;  %v3174_v7 = vld [vmem:[#allocation2 + $0x1f4] sm:$0xf]  ;;  %v3221_v46 = vld [vmem:[#allocation4 + $0x64] sm:$0xf0]  ;;  %v3220_v47 = vld [vmem:[#allocation4 + $0x64] sm:$0xf] }
  0x50   :  { %757 = vmatpush.bf16.msrb.mxu3 %v2460_v10  ;;  %719 = vmatmul.bf16.vlgmr.msrb.gmra.mxu0 %v3500_v13  ;;  %v2512_v10 = vor.u32 %v3177_v4, %v2511_v2  ;;  %v2516_v17 = vor.u32 %v3174_v7, %v2513_v8  ;;  %v2688_v48 = vor.u32 %v3221_v46, %v2687_v45  ;;  %v3218_v53 = vld [vmem:[#allocation4 + $0x54] sm:$0xf]  ;;  %v2681_v54 = vld [vmem:[#allocation4 + $0x58] sm:$0xf0]  ;;  %v2671_v57 = vld [vmem:[#allocation4 + $0x40] sm:$0xf] }
  0x51   :  { %763 = vmatpush.bf16.msra.mxu0 %v2440_v11  ;;  %732 = vmatmul.bf16.vlgmr.msrb.gmra.mxu1 %v3503_v15  ;;  %v2324_v11 = vor.u32 %v3126_v5, %v2321_v6  ;;  %v2684_v56 = vor.u32 %v3218_v53, %v2681_v54  ;;  %v3217_v58 = vld [vmem:[#allocation4 + $0x44] sm:$0xf0]  ;;  %v3216_v59 = vld [vmem:[#allocation4 + $0x44] sm:$0xf]  ;;  %v2759_v60 = vld [vmem:[#allocation4 + $0xf0] sm:$0xf] }
  0x52   :  { %776 = vmatpush.bf16.msra.mxu1 %v2632_v12  ;;  %745 = vmatmul.bf16.vlgmr.msrb.gmra.mxu2 %v3500_v13  ;;  %v2295_v12 = vld [vmem:[#allocation2 + $0x40] sm:$0xf]  ;;  %v3215_v0 = vld [vmem:[#allocation4 + $0x34] sm:$0xf0]  ;;  %v3214_v2 = vld [vmem:[#allocation4 + $0x34] sm:$0xf] }
  0x53   :  { %789 = vmatpush.bf16.msra.mxu2 %v2444_v14  ;;  %758 = vmatmul.bf16.vlgmr.msrb.gmra.mxu3 %v3503_v15  ;;  %v3123_v14 = vld [vmem:[#allocation2 + $0x54] sm:$0xf0]  ;;  %v2655_v6 = vld [vmem:[#allocation4 + $0x20] sm:$0xf]  ;;  %v3213_v7 = vld [vmem:[#allocation4 + $0x24] sm:$0xf0] }
  0x54   :  { %802 = vmatpush.bf16.msra.mxu3 %v2636_v19  ;;  %v3120_v19 = vld [vmem:[#allocation2 + $0x44] sm:$0xf]  ;;  %v2296_v23 = vor.u32 %v3123_v14, %v2295_v12  ;;  %v2751_v8 = vld [vmem:[#allocation4 + $0xe0] sm:$0xf]  ;;  %v2657_v12 = vld [vmem:[#allocation4 + $0x28] sm:$0xf0] }
  0x55   :  { %764 = vmatpush.bf16.msra.mxu0 %v2416_v25  ;;  %v2488_v25 = vor.u32 %v3171_v18, %v2487_v16  ;;  %v3255_v18 = vld [vmem:[#allocation4 + $0x174] sm:$0xf0]  ;;  %v2743_v22 = vld [vmem:[#allocation4 + $0xd0] sm:$0xf]  ;;  %v2639_v34 = vld [vmem:[#allocation4] sm:$0xf] }
  0x56   :  { %777 = vmatpush.bf16.msra.mxu1 %v2608_v26  ;;  %v2300_v26 = vor.u32 %v3120_v19, %v2297_v20  ;;  %v2647_v20 = vld [vmem:[#allocation4 + $0x10] sm:$0xf]  ;;  %v3211_v21 = vld [vmem:[#allocation4 + $0x14] sm:$0xf0]  ;;  %v2761_v45 = vld [vmem:[#allocation4 + $0xf8] sm:$0xf0] }
  0x57   :  { %790 = vmatpush.bf16.msra.mxu2 %v2420_v27  ;;  %v3117_v27 = vld [vmem:[#allocation2 + $0x24] sm:$0xf0]  ;;  %v2951_v46 = vld [vmem:[#allocation6 + $0xf0] sm:$0xf]  ;;  %s3440_s28 = smov 112   ;;  %vm1795_vm10 = vcmask 1041408  }
  0x58   :  { %803 = vmatpush.bf16.msra.mxu3 %v2612_v31  ;;  %v3114_v31 = vld [vmem:[#allocation2 + $0x14] sm:$0xf]  ;;  %v2727_v54 = vld [vmem:[#allocation4 + $0xb0] sm:$0xf]  ;;  %vm1797_vm11 = vcmask 1043456   ;;  %vm1799_vm12 = vcmask 64512  }
  0x59   :  { %765 = vmatpush.bf16.msra.mxu0 %v2392_v37  ;;  %v2272_v37 = vor.u32 %v3117_v27, %v2271_v24  ;;  %v2276_v41 = vor.u32 %v3114_v31, %v2273_v32  ;;  %v2648_v24 = vor.u32 %v3211_v21, %v2647_v20  ;;  %v2649_v27 = vld [vmem:[#allocation4 + $0x18] sm:$0xf0]  ;;  %v2815_v31 = vld [vmem:[#allocation4 + $0x160] sm:$0xf]  ;;  %v3253_v32 = vld [vmem:[#allocation4 + $0x164] sm:$0xf0] }
  0x5a   :  { %778 = vmatpush.bf16.msra.mxu1 %v2584_v38  ;;  %v3222_v38 = vld [vmem:[#allocation4 + $0x74] sm:$0xf]  ;;  %v2816_v33 = vor.u32 %v3253_v32, %v2815_v31  ;;  %v2737_v20 = vld [vmem:[#allocation4 + $0xc8] sm:$0xf0]  ;;  %v2927_v21 = vld [vmem:[#allocation6 + $0xc0] sm:$0xf] }
  0x5b   :  { %791 = vmatpush.bf16.msra.mxu2 %v2396_v39  ;;  %v2697_v39 = vld [vmem:[#allocation4 + $0x78] sm:$0xf0]  ;;  %v2703_v32 = vld [vmem:[#allocation4 + $0x80] sm:$0xf]  ;;  %vm1828_vm13 = vcmask 46080   ;;  %vm1836_vm14 = vcmask 1045504  }
  0x5c   :  { %804 = vmatpush.bf16.msra.mxu3 %v2588_v43  ;;  %v2696_v43 = vor.u32 %v3223_v36, %v2695_v35  ;;  %v2700_v44 = vor.u32 %v3222_v38, %v2697_v39  ;;  %v3209_v35 = vld [vmem:[#allocation4 + $0x4] sm:$0xf0]  ;;  %v2735_v36 = vld [vmem:[#allocation4 + $0xc0] sm:$0xf]  ;;  %vm1832_vm15 = vcmask 48128  }
  0x5d   :  { %766 = vmatpush.bf16.msra.mxu0 %v2368_v49  ;;  %v2689_v49 = vld [vmem:[#allocation4 + $0x68] sm:$0xf0]  ;;  %v2640_v38 = vor.u32 %v3209_v35, %v2639_v34  ;;  %v3233_v39 = vld [vmem:[#allocation4 + $0xc4] sm:$0xf0]  ;;  %v3230_v35 = vld [vmem:[#allocation4 + $0xb4] sm:$0xf] }
  0x5e   :  { %779 = vmatpush.bf16.msra.mxu1 %v2560_v50  ;;  %v2679_v50 = vld [vmem:[#allocation4 + $0x50] sm:$0xf]  ;;  %v2692_v52 = vor.u32 %v3220_v47, %v2689_v49 }
  0x5f   :  { %792 = vmatpush.bf16.msra.mxu2 %v2372_v51  ;;  %v3219_v51 = vld [vmem:[#allocation4 + $0x54] sm:$0xf0]  ;;  %v2807_v49 = vld [vmem:[#allocation4 + $0x150] sm:$0xf] }
  0x60   :  { %805 = vmatpush.bf16.msra.mxu3 %v2564_v55  ;;  %v2680_v55 = vor.u32 %v3219_v51, %v2679_v50  ;;  %v3251_v50 = vld [vmem:[#allocation4 + $0x154] sm:$0xf0] }
  0x61   :  { %767 = vmatpush.bf16.msra.mxu0 %v2344_v61  ;;  %v3239_v61 = vld [vmem:[#allocation4 + $0xf4] sm:$0xf0]  ;;  %v2808_v53 = vor.u32 %v3251_v50, %v2807_v49  ;;  %v3228_v50 = vld [vmem:[#allocation4 + $0xa4] sm:$0xf] }
  0x62   :  { %780 = vmatpush.bf16.msra.mxu1 %v2536_v62  ;;  %v2760_v1 = vor.u32 %v3239_v61, %v2759_v60 }
  0x63   :  { %793 = vmatpush.bf16.msra.mxu2 %v2348_v63  ;;  %v2663_v63 = vld [vmem:[#allocation4 + $0x30] sm:$0xf] }
  0x64   :  { %806 = vmatpush.bf16.msra.mxu3 %v2540_v3  ;;  %v2665_v3 = vld [vmem:[#allocation4 + $0x38] sm:$0xf0]  ;;  %v2664_v4 = vor.u32 %v3215_v0, %v2663_v63  ;;  %v2799_v63 = vld [vmem:[#allocation4 + $0x140] sm:$0xf]  ;;  %v3249_v0 = vld [vmem:[#allocation4 + $0x144] sm:$0xf0] }
  0x65   :  { %768 = vmatpush.bf16.msra.mxu0 %v2320_v9  ;;  %v2668_v5 = vor.u32 %v3214_v2, %v2665_v3  ;;  %v2656_v9 = vor.u32 %v3213_v7, %v2655_v6  ;;  %v2800_v2 = vor.u32 %v3249_v0, %v2799_v63  ;;  %v3229_v3 = vld [vmem:[#allocation4 + $0xa4] sm:$0xf0]  ;;  %v2935_v7 = vld [vmem:[#allocation6 + $0xd0] sm:$0xf]  ;;  %v3271_v63 = vld [vmem:[#allocation6 + $0x74] sm:$0xf0] }
  0x66   :  { %781 = vmatpush.bf16.msra.mxu1 %v2512_v10  ;;  %v3237_v10 = vld [vmem:[#allocation4 + $0xe4] sm:$0xf0] }
  0x67   :  { %794 = vmatpush.bf16.msra.mxu2 %v2324_v11  ;;  %v3212_v11 = vld [vmem:[#allocation4 + $0x24] sm:$0xf]  ;;  %v2752_v14 = vor.u32 %v3237_v10, %v2751_v8  ;;  %v3283_v8 = vld [vmem:[#allocation6 + $0xd4] sm:$0xf0] }
  0x68   :  { %807 = vmatpush.bf16.msra.mxu3 %v2516_v17  ;;  %v2660_v16 = vor.u32 %v3212_v11, %v2657_v12  ;;  %v2823_v17 = vld [vmem:[#allocation4 + $0x170] sm:$0xf]  ;;  %v3247_v12 = vld [vmem:[#allocation4 + $0x134] sm:$0xf0] }
  0x69   :  { %769 = vmatpush.bf16.msra.mxu0 %v2296_v23  ;;  %v2824_v19 = vor.u32 %v3255_v18, %v2823_v17  ;;  %v2936_v17 = vor.u32 %v3283_v8, %v2935_v7  ;;  %v2809_v7 = vld [vmem:[#allocation4 + $0x158] sm:$0xf0] }
  0x6a   :  { %782 = vmatpush.bf16.msra.mxu1 %v2488_v25  ;;  %v3235_v25 = vld [vmem:[#allocation4 + $0xd4] sm:$0xf0] }
  0x6b   :  { %795 = vmatpush.bf16.msra.mxu2 %v2300_v26  ;;  %v3210_v26 = vld [vmem:[#allocation4 + $0x14] sm:$0xf]  ;;  %v2744_v29 = vor.u32 %v3235_v25, %v2743_v22  ;;  %v3281_v22 = vld [vmem:[#allocation6 + $0xc4] sm:$0xf0] }
  0x6c   :  { %808 = vmatpush.bf16.msra.mxu3 %v2492_v30  ;;  %v2652_v30 = vor.u32 %v3210_v26, %v2649_v27  ;;  %v3245_v25 = vld [vmem:[#allocation4 + $0x124] sm:$0xf0] }
  0x6d   :  { %770 = vmatpush.bf16.msra.mxu0 %v2272_v37 }
  0x6e   :  { %783 = vmatpush.bf16.msra.mxu1 %v2464_v40  ;;  %v3208_v40 = vld [vmem:[#allocation4 + $0x4] sm:$0xf] }
  0x6f   :  { %796 = vmatpush.bf16.msra.mxu2 %v2276_v41  ;;  %v2641_v41 = vld [vmem:[#allocation4 + $0x8] sm:$0xf0] }
  0x70   :  { %809 = vmatpush.bf16.msra.mxu3 %v2468_v42  ;;  %771 = vmatmul.bf16.vlgmr.msra.gmra.mxu0 %v3500_v13  ;;  %v2736_v42 = vor.u32 %v3233_v39, %v2735_v36  ;;  %v2729_v36 = vld [vmem:[#allocation4 + $0xb8] sm:$0xf0] }
  0x71   :  { %1151 = vmatpush.bf16.msrb.mxu0 %v2696_v43  ;;  %784 = vmatmul.bf16.vlgmr.msra.gmra.mxu1 %v3503_v15  ;;  %v2644_v43 = vor.u32 %v3208_v40, %v2641_v41  ;;  %v2732_v39 = vor.u32 %v3230_v35, %v2729_v36  ;;  %v2825_v40 = vld [vmem:[#allocation4 + $0x178] sm:$0xf0]  ;;  %v2919_v41 = vld [vmem:[#allocation6 + $0xb0] sm:$0xf]  ;;  %v3246_v35 = vld [vmem:[#allocation4 + $0x134] sm:$0xf] }
  0x72   :  { %797 = vmatmul.bf16.vlgmr.msra.gmra.mxu2 %v3500_v13  ;;  %v2673_v13 = vld [vmem:[#allocation4 + $0x48] sm:$0xf0]  ;;  %1164 = vmatpush.bf16.msrb.mxu1 %v2760_v1  ;;  %v2719_v1 = vld [vmem:[#allocation4 + $0xa0] sm:$0xf] }
  0x73   :  { %810 = vmatmul.bf16.vlgmr.msra.gmra.mxu3 %v3503_v15  ;;  %v2672_v15 = vor.u32 %v3217_v58, %v2671_v57  ;;  %v2676_v62 = vor.u32 %v3216_v59, %v2673_v13  ;;  %1177 = vmatpush.bf16.msrb.mxu2 %v2824_v19  ;;  %v2753_v59 = vld [vmem:[#allocation4 + $0xe8] sm:$0xf0]  ;;  %v2943_v13 = vld [vmem:[#allocation6 + $0xe0] sm:$0xf]  ;;  %v2720_v6 = vor.u32 %v3229_v3, %v2719_v1  ;;  %v3232_v19 = vld [vmem:[#allocation4 + $0xc4] sm:$0xf] }
  0x74   :  { %1190 = vmatpush.bf16.msrb.mxu3 %v2700_v44  ;;  %v3238_v44 = vld [vmem:[#allocation4 + $0xf4] sm:$0xf]  ;;  %v2713_v3 = vld [vmem:[#allocation4 + $0x98] sm:$0xf0] }
  0x75   :  { %1152 = vmatpush.bf16.msrb.mxu0 %v2688_v48  ;;  %v2764_v47 = vor.u32 %v3238_v44, %v2761_v45  ;;  %v3287_v48 = vld [vmem:[#allocation6 + $0xf4] sm:$0xf0]  ;;  %v2775_v45 = vld [vmem:[#allocation4 + $0x110] sm:$0xf] }
  0x76   :  { %1165 = vmatpush.bf16.msrb.mxu1 %v2752_v14  ;;  %v2711_v14 = vld [vmem:[#allocation4 + $0x90] sm:$0xf] }
  0x77   :  { %1178 = vmatpush.bf16.msrb.mxu2 %v2816_v33  ;;  %v3225_v33 = vld [vmem:[#allocation4 + $0x84] sm:$0xf0] }
  0x78   :  { %1191 = vmatpush.bf16.msrb.mxu3 %v2692_v52  ;;  %v2952_v52 = vor.u32 %v3287_v48, %v2951_v46  ;;  %v2704_v34 = vor.u32 %v3225_v33, %v2703_v32  ;;  %v3243_v46 = vld [vmem:[#allocation4 + $0x114] sm:$0xf0]  ;;  %v2871_v32 = vld [vmem:[#allocation6 + $0x50] sm:$0xf] }
  0x79   :  { %1153 = vmatpush.bf16.msrb.mxu0 %v2680_v55  ;;  %v3231_v55 = vld [vmem:[#allocation4 + $0xb4] sm:$0xf0]  ;;  %v2776_v48 = vor.u32 %v3243_v46, %v2775_v45 }
  0x7a   :  { %1166 = vmatpush.bf16.msrb.mxu1 %v2744_v29  ;;  %v2728_v58 = vor.u32 %v3231_v55, %v2727_v54  ;;  %v2740_v29 = vor.u32 %v3232_v19, %v2737_v20  ;;  %v2817_v55 = vld [vmem:[#allocation4 + $0x168] sm:$0xf0]  ;;  %v3224_v20 = vld [vmem:[#allocation4 + $0x84] sm:$0xf]  ;;  %v3267_v33 = vld [vmem:[#allocation6 + $0x54] sm:$0xf0] }
  0x7b   :  { %1179 = vmatpush.bf16.msrb.mxu2 %v2808_v53  ;;  %v3252_v53 = vld [vmem:[#allocation4 + $0x164] sm:$0xf] }
  0x7c   :  { %1192 = vmatpush.bf16.msrb.mxu3 %v2684_v56  ;;  %v3236_v56 = vld [vmem:[#allocation4 + $0xe4] sm:$0xf] }
  0x7d   :  { %1154 = vmatpush.bf16.msrb.mxu0 %v2672_v15  ;;  %v3285_v15 = vld [vmem:[#allocation6 + $0xe4] sm:$0xf0]  ;;  %v2756_v61 = vor.u32 %v3236_v56, %v2753_v59  ;;  %v2911_v56 = vld [vmem:[#allocation6 + $0xa0] sm:$0xf]  ;;  %v2820_v59 = vor.u32 %v3252_v53, %v2817_v55  ;;  %v3242_v53 = vld [vmem:[#allocation4 + $0x114] sm:$0xf] }
  0x7e   :  { %1167 = vmatpush.bf16.msrb.mxu1 %v2736_v42  ;;  %v3279_v42 = vld [vmem:[#allocation6 + $0xb4] sm:$0xf0] }
  0x7f   :  { %1180 = vmatpush.bf16.msrb.mxu2 %v2800_v2  ;;  %v2920_v44 = vor.u32 %v3279_v42, %v2919_v41  ;;  %v3226_v2 = vld [vmem:[#allocation4 + $0x94] sm:$0xf]  ;;  %v2863_v41 = vld [vmem:[#allocation6 + $0x40] sm:$0xf]  ;;  %v3265_v42 = vld [vmem:[#allocation6 + $0x44] sm:$0xf0] }
  0x80   :  { %1193 = vmatpush.bf16.msrb.mxu3 %v2676_v62  ;;  %v2944_v62 = vor.u32 %v3285_v15, %v2943_v13  ;;  %v2767_v15 = vld [vmem:[#allocation4 + $0x100] sm:$0xf]  ;;  %v2864_v45 = vor.u32 %v3265_v42, %v2863_v41  ;;  %v3298_v41 = vld [vmem:[#allocation6 + $0x154] sm:$0xf]  ;;  %v3001_v42 = vld [vmem:[#allocation6 + $0x158] sm:$0xf0] }
  0x81   :  { %1155 = vmatpush.bf16.msrb.mxu0 %v2664_v4  ;;  %v3234_v4 = vld [vmem:[#allocation4 + $0xd4] sm:$0xf] }
  0x82   :  { %1168 = vmatpush.bf16.msrb.mxu1 %v2728_v58 }
  0x84   :  { %1194 = vmatpush.bf16.msrb.mxu3 %v2668_v5  ;;  %v2745_v5 = vld [vmem:[#allocation4 + $0xd8] sm:$0xf0] }
  0x85   :  { %1156 = vmatpush.bf16.msrb.mxu0 %v2656_v9  ;;  %v2791_v9 = vld [vmem:[#allocation4 + $0x130] sm:$0xf]  ;;  %v2748_v11 = vor.u32 %v3234_v4, %v2745_v5  ;;  %v3250_v4 = vld [vmem:[#allocation4 + $0x154] sm:$0xf] }
  0x86   :  { %v2792_v18 = vor.u32 %v3247_v12, %v2791_v9  ;;  %1169 = vmatpush.bf16.msrb.mxu1 %v2720_v6  ;;  %v2716_v6 = vor.u32 %v3226_v2, %v2713_v3  ;;  %v2879_v12 = vld [vmem:[#allocation6 + $0x60] sm:$0xf] }
  0x88   :  { %1195 = vmatpush.bf16.msrb.mxu3 %v2660_v16  ;;  %v3227_v16 = vld [vmem:[#allocation4 + $0x94] sm:$0xf0]  ;;  %1181 = vmatpush.bf16.msrb.mxu2 %v2792_v18 }
  0x89   :  { %1157 = vmatpush.bf16.msrb.mxu0 %v2648_v24  ;;  %v2783_v24 = vld [vmem:[#allocation4 + $0x120] sm:$0xf]  ;;  %v2712_v27 = vor.u32 %v3227_v16, %v2711_v14  ;;  %v3269_v14 = vld [vmem:[#allocation6 + $0x64] sm:$0xf0] }
  0x8a   :  { %v2784_v31 = vor.u32 %v3245_v25, %v2783_v24  ;;  %v2801_v25 = vld [vmem:[#allocation4 + $0x148] sm:$0xf0] }
  0x8b   :  { %1170 = vmatpush.bf16.msrb.mxu1 %v2712_v27  ;;  %v3273_v27 = vld [vmem:[#allocation6 + $0x84] sm:$0xf0] }
  0x8c   :  { %1196 = vmatpush.bf16.msrb.mxu3 %v2652_v30  ;;  %v2928_v30 = vor.u32 %v3281_v22, %v2927_v21  ;;  %1182 = vmatpush.bf16.msrb.mxu2 %v2784_v31  ;;  %v2705_v21 = vld [vmem:[#allocation4 + $0x88] sm:$0xf0]  ;;  %v3248_v22 = vld [vmem:[#allocation4 + $0x144] sm:$0xf] }
  0x8d   :  { %1158 = vmatpush.bf16.msrb.mxu0 %v2640_v38  ;;  %v3254_v38 = vld [vmem:[#allocation4 + $0x174] sm:$0xf]  ;;  %v2708_v24 = vor.u32 %v3224_v20, %v2705_v21  ;;  %v3007_v21 = vld [vmem:[#allocation6 + $0x160] sm:$0xf] }
  0x8f   :  { %1171 = vmatpush.bf16.msrb.mxu1 %v2704_v34 }
  0x90   :  { %1197 = vmatpush.bf16.msrb.mxu3 %v2644_v43  ;;  %v2828_v43 = vor.u32 %v3254_v38, %v2825_v40  ;;  %1183 = vmatpush.bf16.msrb.mxu2 %v2776_v48  ;;  %v2872_v38 = vor.u32 %v3267_v33, %v2871_v32  ;;  %v2855_v48 = vld [vmem:[#allocation6 + $0x30] sm:$0xf] }
  0x91   :  { %1203 = vmatpush.bf16.msra.mxu0 %v2764_v47 }
  0x93   :  { %1216 = vmatpush.bf16.msra.mxu1 %v2828_v43  ;;  %v3244_v43 = vld [vmem:[#allocation4 + $0x124] sm:$0xf] }
  0x94   :  { %1530 = vmatpush.bf16.msra.mxu3 %v2952_v52  ;;  %v2721_v52 = vld [vmem:[#allocation4 + $0xa8] sm:$0xf0] }
  0x95   :  { %1204 = vmatpush.bf16.msra.mxu0 %v2756_v61  ;;  %v2724_v54 = vor.u32 %v3228_v50, %v2721_v52  ;;  %v2887_v61 = vld [vmem:[#allocation6 + $0x70] sm:$0xf]  ;;  %v3263_v50 = vld [vmem:[#allocation6 + $0x34] sm:$0xf0] }
  0x96   :  { %v2888_v1 = vor.u32 %v3271_v63, %v2887_v61  ;;  %v3240_v61 = vld [vmem:[#allocation4 + $0x104] sm:$0xf] }
  0x97   :  { %1217 = vmatpush.bf16.msra.mxu1 %v2820_v59  ;;  %v3261_v59 = vld [vmem:[#allocation6 + $0x24] sm:$0xf0] }
  0x98   :  { %1531 = vmatpush.bf16.msra.mxu3 %v2944_v62 }
  0x99   :  { %1205 = vmatpush.bf16.msra.mxu0 %v2748_v11 }
  0x9c   :  { %1532 = vmatpush.bf16.msra.mxu3 %v2936_v17  ;;  %v2880_v17 = vor.u32 %v3269_v14, %v2879_v12 }
  0x9d   :  { %1206 = vmatpush.bf16.msra.mxu0 %v2740_v29 }
  0xa0   :  { %1533 = vmatpush.bf16.msra.mxu3 %v2928_v30  ;;  %v2804_v30 = vor.u32 %v3248_v22, %v2801_v25  ;;  %v3301_v25 = vld [vmem:[#allocation6 + $0x164] sm:$0xf0] }
  0xa1   :  { %1207 = vmatpush.bf16.msra.mxu0 %v2732_v39  ;;  %v2793_v39 = vld [vmem:[#allocation4 + $0x138] sm:$0xf0] }
  0xa2   :  { %v2796_v40 = vor.u32 %v3246_v35, %v2793_v39  ;;  %v2999_v39 = vld [vmem:[#allocation6 + $0x150] sm:$0xf] }
  0xa4   :  { %1534 = vmatpush.bf16.msra.mxu3 %v2920_v44  ;;  %v2785_v44 = vld [vmem:[#allocation4 + $0x128] sm:$0xf0] }
  0xa5   :  { %1208 = vmatpush.bf16.msra.mxu0 %v2724_v54  ;;  %v2788_v46 = vor.u32 %v3244_v43, %v2785_v44  ;;  %v2777_v54 = vld [vmem:[#allocation4 + $0x118] sm:$0xf0] }
  0xa9   :  { %1209 = vmatpush.bf16.msra.mxu0 %v2716_v6 }
  0xad   :  { %1210 = vmatpush.bf16.msra.mxu0 %v2708_v24 }
  0xae   :  { %v3518_v28 = vpop.f32.mrf.mxu1 }
  0xb0   :  { %v3516_v23 = vpop.f32.mrf.mxu0 }
  0xb1   :  { %v682_v58 = vadd.f32 %v3518_v28, %v3516_v23  ;;  %v2903_v23 = vld [vmem:[#allocation6 + $0x90] sm:$0xf]  ;;  %v3275_v28 = vld [vmem:[#allocation6 + $0x94] sm:$0xf0] }
  0xb2   :  { %v2904_v11 = vor.u32 %v3275_v28, %v2903_v23 }
  0xb3   :  { %v815_v8 = vmul.f32 %v682_v58, %v682_v58  ;;  %v2847_v58 = vld [vmem:[#allocation6 + $0x20] sm:$0xf] }
  0xb5   :  { %v3520_v37 = vpop.f32.mrf.mxu2 }
  0xb6   :  { %v683_v60 = vpop.f32.mrf.mxu1 }
  0xb7   :  { %v3241_v60 = vld [vmem:[#allocation4 + $0x104] sm:$0xf0] }
  0xb8   :  { %v3522_v51 = vpop.f32.mrf.mxu3  ;;  %v670_v57 = vpop.f32.mrf.mxu0  ;;  %v2768_v62 = vor.u32 %v3241_v60, %v2767_v15  ;;  %v2848_v60 = vor.u32 %v3261_v59, %v2847_v58 }
  0xb9   :  { %v3277_v57 = vld [vmem:[#allocation6 + $0xa4] sm:$0xf0] }
  0xba   :  { %v2912_v13 = vor.u32 %v3277_v57, %v2911_v56  ;;  %1184 = vmatpush.bf16.msrb.mxu2 %v2768_v62  ;;  %v2856_v56 = vor.u32 %v3263_v50, %v2855_v48  ;;  %v2780_v57 = vor.u32 %v3242_v53, %v2777_v54  ;;  %v2769_v62 = vld [vmem:[#allocation4 + $0x108] sm:$0xf0]  ;;  %v3297_v50 = vld [vmem:[#allocation6 + $0x144] sm:$0xf0] }
  0xbb   :  { %v2993_v53 = vld [vmem:[#allocation6 + $0x148] sm:$0xf0] }
  0xbc   :  { %1535 = vmatpush.bf16.msra.mxu3 %v2912_v13 }
  0xbd   :  { %v696_v10 = vpop.f32.mrf.mxu2 }
  0xbe   :  { %1517 = vmatpush.bf16.msra.mxu2 %v2888_v1  ;;  %v2812_v10 = vor.u32 %v3250_v4, %v2809_v7  ;;  %v708_v1 = vadd.f32 %v3522_v51, %v3520_v37  ;;  %v2839_v4 = vld [vmem:[#allocation6 + $0x10] sm:$0xf] }
  0xbf   :  { %v3015_v7 = vld [vmem:[#allocation6 + $0x170] sm:$0xf] }
  0xc0   :  { %v709_v26 = vpop.f32.mrf.mxu3  ;;  %1218 = vmatpush.bf16.msra.mxu1 %v2812_v10  ;;  %1536 = vmatpush.bf16.msra.mxu3 %v2904_v11  ;;  %v3302_v10 = vld [vmem:[#allocation6 + $0x174] sm:$0xf]  ;;  %v3017_v11 = vld [vmem:[#allocation6 + $0x178] sm:$0xf0]  ;;  %v816_v37 = vmul.f32 %v708_v1, %v708_v1 }
  0xc1   :  { %v2895_v26 = vld [vmem:[#allocation6 + $0x80] sm:$0xf]  ;;  %v3020_v20 = vor.u32 %v3302_v10, %v3017_v11 }
  0xc2   :  { %1518 = vmatpush.bf16.msra.mxu2 %v2880_v17  ;;  %v2896_v31 = vor.u32 %v3273_v27, %v2895_v26  ;;  %v3257_v17 = vld [vmem:[#allocation6 + $0x4] sm:$0xf0]  ;;  %v3300_v26 = vld [vmem:[#allocation6 + $0x164] sm:$0xf]  ;;  %v3009_v27 = vld [vmem:[#allocation6 + $0x168] sm:$0xf0] }
  0xc4   :  { %1219 = vmatpush.bf16.msra.mxu1 %v2804_v30  ;;  %1537 = vmatpush.bf16.msra.mxu3 %v2896_v31 }
  0xc6   :  { %1519 = vmatpush.bf16.msra.mxu2 %v2872_v38  ;;  %v3012_v38 = vor.u32 %v3300_v26, %v3009_v27  ;;  %v3268_v27 = vld [vmem:[#allocation6 + $0x64] sm:$0xf] }
  0xc8   :  { %1220 = vmatpush.bf16.msra.mxu1 %v2796_v40  ;;  %v3299_v40 = vld [vmem:[#allocation6 + $0x154] sm:$0xf0] }
  0xc9   :  { %v3000_v44 = vor.u32 %v3299_v40, %v2999_v39  ;;  %v3286_v39 = vld [vmem:[#allocation6 + $0xf4] sm:$0xf]  ;;  %v2953_v40 = vld [vmem:[#allocation6 + $0xf8] sm:$0xf0] }
  0xca   :  { %1520 = vmatpush.bf16.msra.mxu2 %v2864_v45  ;;  %v3004_v45 = vor.u32 %v3298_v41, %v3001_v42  ;;  %v3266_v42 = vld [vmem:[#allocation6 + $0x54] sm:$0xf] }
  0xcc   :  { %1221 = vmatpush.bf16.msra.mxu1 %v2788_v46  ;;  %v2991_v46 = vld [vmem:[#allocation6 + $0x140] sm:$0xf] }
  0xcd   :  { %v3524_v47 = vpop.f32.mrf.mxu0 }
  0xce   :  { %v3526_v49 = vpop.f32.mrf.mxu1  ;;  %1521 = vmatpush.bf16.msra.mxu2 %v2856_v56 }
  0xcf   :  { %v734_v31 = vadd.f32 %v3526_v49, %v3524_v47 }
  0xd0   :  { %1222 = vmatpush.bf16.msra.mxu1 %v2780_v57  ;;  %v2992_v57 = vor.u32 %v3297_v50, %v2991_v46 }
  0xd1   :  { %v817_v47 = vmul.f32 %v734_v31, %v734_v31 }
  0xd2   :  { %1522 = vmatpush.bf16.msra.mxu2 %v2848_v60  ;;  %v3294_v60 = vld [vmem:[#allocation6 + $0x134] sm:$0xf] }
  0xd5   :  { %v746_v0 = vpop.f32.mrf.mxu2  ;;  %v722_v16 = vpop.f32.mrf.mxu0 }
  0xd6   :  { %v759_v5 = vpop.f32.mrf.mxu3  ;;  %v735_v19 = vpop.f32.mrf.mxu1  ;;  %v2831_v16 = vld [vmem:[#allocation6] sm:$0xf] }
  0xd7   :  { %v760_v9 = vadd.f32 %v759_v5, %v746_v0  ;;  %v2772_v0 = vor.u32 %v3240_v61, %v2769_v62  ;;  %v3259_v5 = vld [vmem:[#allocation6 + $0x14] sm:$0xf0]  ;;  %v2832_v30 = vor.u32 %v3257_v17, %v2831_v16  ;;  %v2985_v61 = vld [vmem:[#allocation6 + $0x138] sm:$0xf0]  ;;  %v3290_v17 = vld [vmem:[#allocation6 + $0x114] sm:$0xf] }
  0xd8   :  { %v2840_v23 = vor.u32 %v3259_v5, %v2839_v4  ;;  %v3293_v4 = vld [vmem:[#allocation6 + $0x124] sm:$0xf0]  ;;  %v3292_v5 = vld [vmem:[#allocation6 + $0x124] sm:$0xf] }
  0xd9   :  { %v818_v18 = vmul.f32 %v760_v9, %v760_v9  ;;  %1223 = vmatpush.bf16.msra.mxu1 %v2772_v0  ;;  %v3303_v9 = vld [vmem:[#allocation6 + $0x174] sm:$0xf0] }
  0xda   :  { %1523 = vmatpush.bf16.msra.mxu2 %v2840_v23  ;;  %v3016_v19 = vor.u32 %v3303_v9, %v3015_v7 }
  0xdb   :  { %v3530_v29 = vadd.f32 %v818_v18, %v815_v8 }
  0xdd   :  { %3334 = vrsqrt.f32 %v3530_v29  ;;  %v748_v34 = vpop.f32.mrf.mxu2  ;;  %vm831_vm0 = vcmp.eq.f32.partialorder %v3530_v29, inf  ;;  %v834_v12 = vand.u32 2147483648, %v3530_v29  ;;  %vm833_vm1 = vcmp.eq.f32.partialorder %v3530_v29, 0.0 }
  0xde   :  { %v761_v36 = vpop.f32.mrf.mxu3  ;;  %1524 = vmatpush.bf16.msra.mxu2 %v2832_v30  ;;  %v2881_v30 = vld [vmem:[#allocation6 + $0x68] sm:$0xf0] }
  0xdf   :  { %v3008_v36 = vor.u32 %v3301_v25, %v3007_v21 }
  0xe3   :  { %v3335_v52 = vpop.eup %3334 }
  0xe4   :  { %v825_v55 = vmul.f32 %v3335_v52, %v3530_v29 }
  0xe6   :  { %v826_v13 = vmul.f32 %v3335_v52, %v825_v55 }
  0xe8   :  { %v827_v15 = vmul.f32 0.5, %v826_v13  ;;  %v2983_v13 = vld [vmem:[#allocation6 + $0x130] sm:$0xf] }
  0xea   :  { %v828_v63 = vsub.f32 1.5, %v827_v15  ;;  %v3295_v15 = vld [vmem:[#allocation6 + $0x134] sm:$0xf0] }
  0xeb   :  { %v2984_v1 = vor.u32 %v3295_v15, %v2983_v13  ;;  %v2937_v13 = vld [vmem:[#allocation6 + $0xd8] sm:$0xf0]  ;;  %v3262_v15 = vld [vmem:[#allocation6 + $0x34] sm:$0xf] }
  0xec   :  { %v829_v3 = vmul.f32 %v3335_v52, %v828_v63  ;;  %v3296_v52 = vld [vmem:[#allocation6 + $0x144] sm:$0xf] }
  0xed   :  { %v772_v2 = vpop.f32.mrf.mxu0  ;;  %v2996_v58 = vor.u32 %v3296_v52, %v2993_v53  ;;  %v3284_v53 = vld [vmem:[#allocation6 + $0xe4] sm:$0xf] }
  0xee   :  { %v785_v6 = vpop.f32.mrf.mxu1  ;;  %v830_v8 = vmul.f32 %v829_v3, %v3530_v29  ;;  %v2975_v3 = vld [vmem:[#allocation6 + $0x120] sm:$0xf] }
  0xef   :  { %v786_v28 = vadd.f32 %v785_v6, %v772_v2  ;;  %v2988_v2 = vor.u32 %v3294_v60, %v2985_v61  ;;  %v2977_v6 = vld [vmem:[#allocation6 + $0x128] sm:$0xf0]  ;;  %v2976_v11 = vor.u32 %v3293_v4, %v2975_v3  ;;  %v3280_v61 = vld [vmem:[#allocation6 + $0xc4] sm:$0xf]  ;;  %v3278_v3 = vld [vmem:[#allocation6 + $0xb4] sm:$0xf] }
  0xf0   :  { %v832_v14 = vsel %vm831_vm0, %v3530_v29, %v830_v8  ;;  %v2889_v8 = vld [vmem:[#allocation6 + $0x78] sm:$0xf0] }
  0xf1   :  { %v819_v51 = vmul.f32 %v786_v28, %v786_v28  ;;  %v835_v18 = vsel %vm833_vm1, %v834_v12, %v832_v14  ;;  %v3270_v28 = vld [vmem:[#allocation6 + $0x74] sm:$0xf]  ;;  %v2980_v12 = vor.u32 %v3292_v5, %v2977_v6  ;;  %v2921_v4 = vld [vmem:[#allocation6 + $0xb8] sm:$0xf0] }
  0xf2   :  { %v3543_v24 = vpack.c.bf16 %v835_v18, %v835_v18  ;;  %v2969_v18 = vld [vmem:[#allocation6 + $0x118] sm:$0xf0]  ;;  %v2892_v21 = vor.u32 %v3270_v28, %v2889_v8  ;;  %v3258_v6 = vld [vmem:[#allocation6 + $0x14] sm:$0xf]  ;;  %v3276_v28 = vld [vmem:[#allocation6 + $0xa4] sm:$0xf] }
  0xf3   :  { %v3541_v22 = vadd.f32 %v819_v51, %v816_v37  ;;  %v2967_v37 = vld [vmem:[#allocation6 + $0x110] sm:$0xf]  ;;  %v3291_v51 = vld [vmem:[#allocation6 + $0x114] sm:$0xf0]  ;;  %v2913_v8 = vld [vmem:[#allocation6 + $0xa8] sm:$0xf0] }
  0xf4   :  { %1159 = vmatmul.bf16.vlgmr.msrb.gmra.mxu0 %v3543_v24  ;;  %1198 = vmatmul.bf16.vlgmr.msrb.gmra.mxu3 %v3543_v24  ;;  %v2968_v31 = vor.u32 %v3291_v51, %v2967_v37  ;;  %v3274_v37 = vld [vmem:[#allocation6 + $0x94] sm:$0xf]  ;;  %v2905_v51 = vld [vmem:[#allocation6 + $0x98] sm:$0xf0] }
  0xf5   :  { %v798_v32 = vpop.f32.mrf.mxu2  ;;  %3336 = vrsqrt.f32 %v3541_v22  ;;  %v774_v33 = vpop.f32.mrf.mxu0  ;;  %1543 = vmatpush.bf16.msrb.mxu0 %v3016_v19  ;;  %1582 = vmatpush.bf16.msrb.mxu3 %v3020_v20  ;;  %vm843_vm2 = vcmp.eq.f32.partialorder %v3541_v22, inf  ;;  %v846_v14 = vand.u32 2147483648, %v3541_v22  ;;  %vm845_vm3 = vcmp.eq.f32.partialorder %v3541_v22, 0.0 }
  0xf6   :  { %v811_v29 = vpop.f32.mrf.mxu3  ;;  %v787_v35 = vpop.f32.mrf.mxu1 }
  0xf7   :  { %v812_v34 = vadd.f32 %v811_v29, %v798_v32  ;;  %v2972_v32 = vor.u32 %v3290_v17, %v2969_v18  ;;  %v2959_v29 = vld [vmem:[#allocation6 + $0x100] sm:$0xf]  ;;  %v3288_v35 = vld [vmem:[#allocation6 + $0x104] sm:$0xf]  ;;  %v2897_v18 = vld [vmem:[#allocation6 + $0x88] sm:$0xf0] }
  0xf8   :  { %v3272_v17 = vld [vmem:[#allocation6 + $0x84] sm:$0xf] }
  0xf9   :  { %v820_v49 = vmul.f32 %v812_v34, %v812_v34  ;;  %1544 = vmatpush.bf16.msrb.mxu0 %v3008_v36  ;;  %1583 = vmatpush.bf16.msrb.mxu3 %v3012_v38  ;;  %v3289_v34 = vld [vmem:[#allocation6 + $0x104] sm:$0xf0]  ;;  %v2961_v36 = vld [vmem:[#allocation6 + $0x108] sm:$0xf0] }
  0xfb   :  { %v3550_v43 = vadd.f32 %v820_v49, %v817_v47  ;;  %v3337_v48 = vpop.eup %3336  ;;  %v2873_v47 = vld [vmem:[#allocation6 + $0x58] sm:$0xf0]  ;;  %v2960_v49 = vor.u32 %v3289_v34, %v2959_v29  ;;  %v3310_v29 = vld [vmem:[%s3681_s4 + $0x30] sm:$0xff] }
  0xfc   :  { %v837_v55 = vmul.f32 %v3337_v48, %v3541_v22  ;;  %v2876_v52 = vor.u32 %v3266_v42, %v2873_v47  ;;  %v3306_v42 = vld [vmem:[%s3681_s4 + $0x10] sm:$0xff] }
  0xfd   :  { %3338 = vrsqrt.f32 %v3550_v43  ;;  %v800_v54 = vpop.f32.mrf.mxu2  ;;  %1545 = vmatpush.bf16.msrb.mxu0 %v3000_v44  ;;  %1584 = vmatpush.bf16.msrb.mxu3 %v3004_v45  ;;  %vm855_vm4 = vcmp.eq.f32.partialorder %v3550_v43, inf  ;;  %v858_v41 = vand.u32 2147483648, %v3550_v43  ;;  %v2964_v44 = vor.u32 %v3288_v35, %v2961_v36  ;;  %v3308_v35 = vld [vmem:[%s3681_s4 + $0x20] sm:$0xff]  ;;  %v3318_v47 = vld [vmem:[%s3681_s4 + $0x70] sm:$0xff] }
  0xfe   :  { %v813_v56 = vpop.f32.mrf.mxu3  ;;  %v838_v59 = vmul.f32 %v3337_v48, %v837_v55  ;;  %vm857_vm5 = vcmp.eq.f32.partialorder %v3550_v43, 0.0  ;;  %v2945_v54 = vld [vmem:[#allocation6 + $0xe8] sm:$0xf0]  ;;  %v3264_v55 = vld [vmem:[#allocation6 + $0x44] sm:$0xf] }
  0xff   :  { %v2865_v56 = vld [vmem:[#allocation6 + $0x48] sm:$0xf0] }
 0x100   :  { %v839_v62 = vmul.f32 0.5, %v838_v59  ;;  %v3282_v59 = vld [vmem:[#allocation6 + $0xd4] sm:$0xf] }
 0x101   :  { %1546 = vmatpush.bf16.msrb.mxu0 %v2992_v57  ;;  %1585 = vmatpush.bf16.msrb.mxu3 %v2996_v58  ;;  %v2948_v57 = vor.u32 %v3284_v53, %v2945_v54  ;;  %v2868_v58 = vor.u32 %v3264_v55, %v2865_v56  ;;  %v2940_v60 = vor.u32 %v3282_v59, %v2937_v13  ;;  %v3315_v56 = vld [vmem:[%s3681_s4 + $0x58] sm:$0xff]  ;;  %v3314_v13 = vld [vmem:[%s3681_s4 + $0x50] sm:$0xff] }
 0x102   :  { %v840_v0 = vsub.f32 1.5, %v839_v62  ;;  %v2929_v62 = vld [vmem:[#allocation6 + $0xc8] sm:$0xf0] }
 0x103   :  { %v3339_v63 = vpop.eup %3338 }
 0x104   :  { %v849_v7 = vmul.f32 %v3339_v63, %v3550_v43  ;;  %v841_v23 = vmul.f32 %v3337_v48, %v840_v0  ;;  %v2956_v48 = vor.u32 %v3286_v39, %v2953_v40  ;;  %v3260_v0 = vld [vmem:[#allocation6 + $0x24] sm:$0xf] }
 0x105   :  { %1547 = vmatpush.bf16.msrb.mxu0 %v2984_v1  ;;  %1586 = vmatpush.bf16.msrb.mxu3 %v2988_v2  ;;  %v2849_v1 = vld [vmem:[#allocation6 + $0x28] sm:$0xf0]  ;;  %v2932_v2 = vor.u32 %v3280_v61, %v2929_v62  ;;  %v3313_v62 = vld [vmem:[%s3681_s4 + $0x48] sm:$0xff] }
 0x106   :  { %v850_v9 = vmul.f32 %v3339_v63, %v849_v7  ;;  %v842_v10 = vmul.f32 %v841_v23, %v3541_v22  ;;  %v2852_v5 = vor.u32 %v3260_v0, %v2849_v1  ;;  %v2841_v7 = vld [vmem:[#allocation6 + $0x18] sm:$0xf0]  ;;  %v2924_v23 = vor.u32 %v3278_v3, %v2921_v4 }
 0x107   :  { %v3312_v1 = vld [vmem:[%s3681_s4 + $0x40] sm:$0xff] }
 0x108   :  { %v851_v16 = vmul.f32 0.5, %v850_v9  ;;  %v844_v19 = vsel %vm843_vm2, %v3541_v22, %v842_v10  ;;  %v2884_v22 = vor.u32 %v3268_v27, %v2881_v30  ;;  %v2844_v9 = vor.u32 %v3258_v6, %v2841_v7  ;;  %v3256_v10 = vld [vmem:[#allocation6 + $0x4] sm:$0xf]  ;;  %v3311_v30 = vld [vmem:[%s3681_s4 + $0x38] sm:$0xff] }
 0x109   :  { %v847_v20 = vsel %vm845_vm3, %v846_v14, %v844_v19  ;;  %1548 = vmatpush.bf16.msrb.mxu0 %v2976_v11  ;;  %1587 = vmatpush.bf16.msrb.mxu3 %v2980_v12  ;;  %v2833_v11 = vld [vmem:[#allocation6 + $0x8] sm:$0xf0]  ;;  %v2916_v12 = vor.u32 %v3276_v28, %v2913_v8  ;;  %v2900_v19 = vor.u32 %v3272_v17, %v2897_v18 }
 0x10a   :  { %v852_v25 = vsub.f32 1.5, %v851_v16  ;;  %v3560_v26 = vpack.c.bf16 %v847_v20, %v847_v20  ;;  %v2836_v14 = vor.u32 %v3256_v10, %v2833_v11  ;;  %v2908_v16 = vor.u32 %v3274_v37, %v2905_v51 }
 0x10c   :  { %v853_v33 = vmul.f32 %v3339_v63, %v852_v25  ;;  %1172 = vmatmul.bf16.vlgmr.msrb.gmra.mxu1 %v3560_v26  ;;  %1211 = vmatmul.bf16.vlgmr.msra.gmra.mxu0 %v3560_v26 }
 0x10d   :  { %1538 = vmatmul.bf16.vlgmr.msra.gmra.mxu3 %v3560_v26  ;;  %1556 = vmatpush.bf16.msrb.mxu1 %v2892_v21 }
 0x10e   :  { %v854_v38 = vmul.f32 %v853_v33, %v3550_v43  ;;  %1549 = vmatpush.bf16.msrb.mxu0 %v2968_v31  ;;  %1588 = vmatpush.bf16.msrb.mxu3 %v2972_v32 }
 0x110   :  { %v856_v45 = vsel %vm855_vm4, %v3550_v43, %v854_v38  ;;  %v2857_v43 = vld [vmem:[#allocation6 + $0x38] sm:$0xf0]  ;;  %v3319_v38 = vld [vmem:[%s3681_s4 + $0x78] sm:$0xff] }
 0x111   :  { %v859_v46 = vsel %vm857_vm5, %v858_v41, %v856_v45  ;;  %1557 = vmatpush.bf16.msrb.mxu1 %v2884_v22  ;;  %v2860_v63 = vor.u32 %v3262_v15, %v2857_v43  ;;  %v3307_v22 = vld [vmem:[%s3681_s4 + $0x18] sm:$0xff]  ;;  %v3317_v45 = vld [vmem:[%s3681_s4 + $0x68] sm:$0xff] }
 0x112   :  { %v862_v50 = vpack.c.bf16 %v859_v46, %v859_v46  ;;  %1550 = vmatpush.bf16.msrb.mxu0 %v2960_v49  ;;  %1589 = vmatpush.bf16.msrb.mxu3 %v2964_v44  ;;  %v3305_v44 = vld [vmem:[%s3681_s4 + $0x8] sm:$0xff] }
 0x114   :  { %1185 = vmatmul.bf16.vlgmr.msrb.gmra.mxu2 %v862_v50 }
 0x115   :  { %1569 = vmatpush.bf16.msrb.mxu2 %v2956_v48  ;;  %1558 = vmatpush.bf16.msrb.mxu1 %v2876_v52  ;;  %v3304_v48 = vld [vmem:[%s3681_s4] sm:$0xff] }
 0x116   :  { %1755 = vmatpush.bf16.msra.mxu0 %v3311_v30 }
 0x119   :  { %1570 = vmatpush.bf16.msrb.mxu2 %v2948_v57  ;;  %1559 = vmatpush.bf16.msrb.mxu1 %v2868_v58 }
 0x11a   :  { %1756 = vmatpush.bf16.msra.mxu0 %v3310_v29 }
 0x11c   :  { %1224 = vmatmul.bf16.vlgmr.msra.gmra.mxu1 %v862_v50  ;;  %1551 = vmatmul.bf16.vlgmr.msrb.gmra.mxu0 %v862_v50 }
 0x11d   :  { %1571 = vmatpush.bf16.msrb.mxu2 %v2940_v60  ;;  %1590 = vmatmul.bf16.vlgmr.msrb.gmra.mxu3 %v862_v50  ;;  %v3316_v50 = vld [vmem:[%s3681_s4 + $0x60] sm:$0xff] }
 0x11e   :  { %1560 = vmatpush.bf16.msrb.mxu1 %v2860_v63 }
 0x121   :  { %1572 = vmatpush.bf16.msrb.mxu2 %v2932_v2 }
 0x122   :  { %1561 = vmatpush.bf16.msrb.mxu1 %v2852_v5 }
 0x124   :  { %1525 = vmatmul.bf16.vlgmr.msra.gmra.mxu2 %v3543_v24 }
 0x125   :  { %1573 = vmatpush.bf16.msrb.mxu2 %v2924_v23 }
 0x126   :  { %1562 = vmatpush.bf16.msrb.mxu1 %v2844_v9 }
 0x129   :  { %1574 = vmatpush.bf16.msrb.mxu2 %v2916_v12 }
 0x12a   :  { %1563 = vmatpush.bf16.msrb.mxu1 %v2836_v14 }
 0x12d   :  { %1575 = vmatpush.bf16.msrb.mxu2 %v2908_v16  ;;  %1564 = vmatmul.bf16.vlgmr.msrb.gmra.mxu1 %v3543_v24  ;;  %v3309_v24 = vld [vmem:[%s3681_s4 + $0x28] sm:$0xff]  ;;  %s3439_s4 = smov 120  }
 0x12e   :  { %1757 = vmatpush.bf16.msra.mxu0 %v3309_v24  ;;  %1768 = vmatpush.bf16.msra.mxu1 %v3319_v38 }
 0x131   :  { %1576 = vmatpush.bf16.msrb.mxu2 %v2900_v19 }
 0x132   :  { %1758 = vmatpush.bf16.msra.mxu0 %v3308_v35  ;;  %1769 = vmatpush.bf16.msra.mxu1 %v3318_v47 }
 0x134   :  { %1577 = vmatmul.bf16.vlgmr.msrb.gmra.mxu2 %v3560_v26 }
 0x136   :  { %1759 = vmatpush.bf16.msra.mxu0 %v3307_v22  ;;  %1770 = vmatpush.bf16.msra.mxu1 %v3317_v45 }
 0x13a   :  { %1760 = vmatpush.bf16.msra.mxu0 %v3306_v42  ;;  %1771 = vmatpush.bf16.msra.mxu1 %v3316_v50 }
 0x13e   :  { %1761 = vmatpush.bf16.msra.mxu0 %v3305_v44  ;;  %1772 = vmatpush.bf16.msra.mxu1 %v3315_v56 }
 0x142   :  { %1762 = vmatpush.bf16.msra.mxu0 %v3304_v48  ;;  %1773 = vmatpush.bf16.msra.mxu1 %v3314_v13  ;;  %v1823_v48 = vld [vmem:[%s3684_s7] sm:$0x3f] }
 0x146   :  { %1774 = vmatpush.bf16.msra.mxu1 %v3313_v62 }
 0x14a   :  { %1775 = vmatpush.bf16.msra.mxu1 %v3312_v1 }
 0x171   :  { %v1160_v20 = vpop.f32.mrf.mxu0 }
 0x177   :  { %v1199_v21 = vpop.f32.mrf.mxu3 }
 0x179   :  { %v1162_v25 = vpop.f32.mrf.mxu0 }
 0x17f   :  { %v1201_v27 = vpop.f32.mrf.mxu3 }
 0x189   :  { %v1173_v31 = vpop.f32.mrf.mxu1  ;;  %v1212_v32 = vpop.f32.mrf.mxu0 }
 0x18a   :  { %v1174_v54 = vadd.f32 %v1173_v31, %v1160_v20  ;;  %v1213_v4 = vadd.f32 %v1212_v32, %v1199_v21 }
 0x190   :  { %v1539_v26 = vpop.f32.mrf.mxu3 }
 0x191   :  { %v1175_v33 = vpop.f32.mrf.mxu1  ;;  %v1214_v34 = vpop.f32.mrf.mxu0 }
 0x197   :  { %v1186_v36 = vpop.f32.mrf.mxu2 }
 0x198   :  { %v1541_v39 = vpop.f32.mrf.mxu3  ;;  %v1187_v57 = vadd.f32 %v1186_v36, %v1174_v54 }
 0x199   :  { %v1225_v40 = vpop.f32.mrf.mxu1  ;;  %v1552_v41 = vpop.f32.mrf.mxu0 }
 0x19a   :  { %v1595_v60 = vmul.f32 %v1187_v57, %v1187_v57  ;;  %v1226_v7 = vadd.f32 %v1225_v40, %v1213_v4 }
 0x19c   :  { %v1596_v10 = vmul.f32 %v1226_v7, %v1226_v7 }
 0x19f   :  { %v1188_v49 = vpop.f32.mrf.mxu2 }
 0x1a0   :  { %v1591_v46 = vpop.f32.mrf.mxu3 }
 0x1a1   :  { %v1227_v52 = vpop.f32.mrf.mxu1  ;;  %v1554_v53 = vpop.f32.mrf.mxu0 }
 0x1a7   :  { %v1526_v55 = vpop.f32.mrf.mxu2 }
 0x1a8   :  { %v1540_v58 = vadd.f32 %v1539_v26, %v1526_v55  ;;  %v1593_v59 = vpop.f32.mrf.mxu3  ;;  %v3629_v55 = vld [vmem:[%s3682_s5] sm:$0x3] }
 0x1aa   :  { %v1553_v15 = vadd.f32 %v1552_v41, %v1540_v58  ;;  %v1565_v43 = vpop.f32.mrf.mxu1 }
 0x1ac   :  { %v1597_v61 = vmul.f32 %v1553_v15, %v1553_v15  ;;  %v3441_v15 = vmov 0  }
 0x1ad   :  { %3331 = vset.pattern.permute.xlu1 %v3441_v15  ;;  %3332 = vset.pattern.permute.xlu2 %v3441_v15 }
 0x1ae   :  { %v1599_v63 = vadd.f32 %v1597_v61, %v1595_v60  ;;  %3333 = vset.pattern.permute.xlu0 %v3441_v15 }
 0x1af   :  { %v1528_v0 = vpop.f32.mrf.mxu2 }
 0x1b0   :  { %3340 = vrsqrt.f32 %v1599_v63  ;;  %vm1608_vm6 = vcmp.eq.f32.partialorder %v1599_v63, inf  ;;  %v1611_v17 = vand.u32 2147483648, %v1599_v63  ;;  %vm1610_vm7 = vcmp.eq.f32.partialorder %v1599_v63, 0.0 }
 0x1b2   :  { %v1567_v2 = vpop.f32.mrf.mxu1 }
 0x1b6   :  { %v3341_v3 = vpop.eup %3340 }
 0x1b7   :  { %v1578_v5 = vpop.f32.mrf.mxu2  ;;  %v1602_v6 = vmul.f32 %v3341_v3, %v1599_v63 }
 0x1b8   :  { %v1579_v23 = vadd.f32 %v1578_v5, %v1565_v43 }
 0x1b9   :  { %v1603_v28 = vmul.f32 %v3341_v3, %v1602_v6 }
 0x1ba   :  { %v1592_v8 = vadd.f32 %v1591_v46, %v1579_v23 }
 0x1bb   :  { %v1604_v9 = vmul.f32 0.5, %v1603_v28 }
 0x1bc   :  { %v1598_v11 = vmul.f32 %v1592_v8, %v1592_v8 }
 0x1bd   :  { %v1605_v12 = vsub.f32 1.5, %v1604_v9 }
 0x1be   :  { %v1600_v37 = vadd.f32 %v1598_v11, %v1596_v10  ;;  %v1826_v10 = vld [vmem:[%s3683_s6] sm:$0x3f] }
 0x1bf   :  { %v1580_v51 = vpop.f32.mrf.mxu2  ;;  %v1606_v14 = vmul.f32 %v3341_v3, %v1605_v12 }
 0x1c0   :  { %3342 = vrsqrt.f32 %v1600_v37  ;;  %vm1620_vm8 = vcmp.eq.f32.partialorder %v1600_v37, inf  ;;  %v1623_v24 = vand.u32 2147483648, %v1600_v37  ;;  %vm1622_vm9 = vcmp.eq.f32.partialorder %v1600_v37, 0.0 }
 0x1c1   :  { %v1607_v16 = vmul.f32 %v1606_v14, %v1599_v63 }
 0x1c3   :  { %v1609_v18 = vsel %vm1608_vm6, %v1599_v63, %v1607_v16  ;;  %vm1888_vm6 = vcmask 15360  }
 0x1c4   :  { %v1612_v19 = vsel %vm1610_vm7, %v1611_v17, %v1609_v18 }
 0x1c5   :  { %v1625_v20 = vpack.c.bf16 %v1612_v19, %v1612_v19 }
 0x1c6   :  { %v3343_v21 = vpop.eup %3342 }
 0x1c7   :  { %1763 = vmatmul.bf16.vlgmr.msra.gmra.mxu0 %v1625_v20  ;;  %v1614_v25 = vmul.f32 %v3343_v21, %v1600_v37 }
 0x1c9   :  { %v1615_v27 = vmul.f32 %v3343_v21, %v1614_v25 }
 0x1cb   :  { %v1616_v30 = vmul.f32 0.5, %v1615_v27 }
 0x1cd   :  { %v1617_v31 = vsub.f32 1.5, %v1616_v30 }
 0x1cf   :  { %v1618_v32 = vmul.f32 %v3343_v21, %v1617_v31 }
 0x1d1   :  { %v1619_v29 = vmul.f32 %v1618_v32, %v1600_v37 }
 0x1d3   :  { %v1621_v26 = vsel %vm1620_vm8, %v1600_v37, %v1619_v29 }
 0x1d4   :  { %v1624_v33 = vsel %vm1622_vm9, %v1623_v24, %v1621_v26 }
 0x1d5   :  { %v1626_v34 = vpack.c.bf16 %v1624_v33, %v1624_v33 }
 0x1d7   :  { %1776 = vmatmul.bf16.vlgmr.msra.gmra.mxu1 %v1626_v34 }
 0x244   :  { %v1764_v35 = vpop.f32.mrf.mxu0 }
 0x24c   :  { %v1766_v36 = vpop.f32.mrf.mxu0 }
 0x254   :  { %v1777_v22 = vpop.f32.mrf.mxu1 }
 0x255   :  { %v1778_v38 = vadd.f32 %v1777_v22, %v1764_v35 }
 0x257   :  { %v1782_v39 = vrot.slane %v1778_v38, 6 }
 0x259   :  { %v1784_v40 = vsub.f32 %v1778_v38, %v1782_v39 }
 0x25b   :  { %1788 = vrot.lane.b32.xlu0 %v1784_v40, %s3439_s4  ;;  %v1791_v42 = vrot.slane %v1784_v40, 6  ;;  %v1786_v49 = vrot.slane %v1784_v40, 2 }
 0x25c   :  { %v1779_v41 = vpop.f32.mrf.mxu1 }
 0x263   :  { %1792 = vrot.lane.b32.xlu0 %v1791_v42, %s3440_s28 }
 0x2cd   :  { %v1789_v47 = vpop.permute.xlu0 %1788 }
 0x2ce   :  { %v1796_v44 = vsel %vm1795_vm10, %v1786_v49, %v1789_v47 }
 0x2d5   :  { %v1793_v45 = vpop.permute.xlu0 %1792 }
 0x2d6   :  { %v1798_v46 = vsel %vm1797_vm11, %v1796_v44, %v1793_v45 }
 0x2d7   :  { %3085 = vmatpush.xpose.msk.msra.mxu2 %vm1799_vm12, %v1798_v46 }
 0x2da   :  { %3086 = vmatmul.msk.f32.vlgmr.msra.gmra.mxu2 %vm1799_vm12, %v1798_v46 }
 0x35d   :  { %v1820_v50 = vpop.f32.mrf.mxu2 }
 0x35e   :  { %v1824_v52 = vmul.f32 %v1823_v48, %v1820_v50 }
 0x360   :  { %v1827_v53 = vmul.f32 %v1824_v52, %v1824_v52 }
 0x362   :  { %v1829_v54 = vsel %vm1828_vm13, %v1827_v53, 0.0  ;;  %v2155_v53 = vlaneseq }
 0x363   :  { %1830 = vadd.xlane.f32.xlu1 %v1829_v54 }
 0x364   :  { %v2156_v54 = vshrl.u32 %v2155_v53, 7 }
 0x3d6   :  { %v1831_v56 = vpop.xlane.xlu1 %1830 }
 0x3d7   :  { %3087 = vmatpush.msk.msra.mxu3 %vm1836_vm14, %v1831_v56  ;;  %v2158_v56 = vand.u32 127, %v2155_v53 }
 0x3d8   :  { %3088 = vmatmul.msk.f32.vlgmr.msra.gmra.mxu3 %vm1832_vm15, %v3629_v55 }
 0x45b   :  { %v1857_v57 = vpop.f32.mrf.mxu3 }
 0x45c   :  { %3344 = vrsqrt.f32 %v1857_v57  ;;  %vm1867_vm0 = vcmp.eq.f32.partialorder %v1857_v57, inf  ;;  %v1870_v63 = vand.u32 2147483648, %v1857_v57  ;;  %vm1869_vm1 = vcmp.eq.f32.partialorder %v1857_v57, 0.0 }
 0x462   :  { %v3345_v58 = vpop.eup %3344 }
 0x463   :  { %v1861_v59 = vmul.f32 %v3345_v58, %v1857_v57 }
 0x465   :  { %v1862_v13 = vmul.f32 %v3345_v58, %v1861_v59 }
 0x467   :  { %v1863_v43 = vmul.f32 0.5, %v1862_v13 }
 0x469   :  { %v1864_v60 = vsub.f32 1.5, %v1863_v43 }
 0x46b   :  { %v1865_v61 = vmul.f32 %v3345_v58, %v1864_v60 }
 0x46d   :  { %v1866_v62 = vmul.f32 %v1865_v61, %v1857_v57 }
 0x46f   :  { %v1868_v0 = vsel %vm1867_vm0, %v1857_v57, %v1866_v62  ;;  %v3442_v57 = vmov 0.0  }
 0x470   :  { %v3634_v1 = vsel %vm1869_vm1, %v1870_v63, %v1868_v0 }
 0x471   :  { %v1872_v2 = vadd.f32 1e-30, %v3634_v1 }
 0x473   :  { %3346 = vrcp.f32 %v1872_v2  ;;  %v1884_v6 = vand.u32 2147483648, %v1872_v2  ;;  %v1882_v23 = vand.u32 2147483647, %v1872_v2  ;;  %vm1878_vm3 = vweird.f32 %v1872_v2 }
 0x475   :  { %v1885_v8 = vor.u32 1.1754944e-38, %v1884_v6  ;;  %vm1883_vm5 = vcmp.eq.f32.partialorder %v1882_v23, 8.507059e+37 }
 0x479   :  { %v3347_v3 = vpop.eup %3346 }
 0x47a   :  { %v1874_v4 = vmul.f32 %v3347_v3, %v1872_v2  ;;  %vm1879_vm2 = vweird.f32 %v3347_v3 }
 0x47b   :  { %vm1880_vm4 = vmor %vm1878_vm3, %vm1879_vm2  ;;  %vm2245_vm3 = vcmask 1024  }
 0x47c   :  { %v1875_v5 = vsub.f32 1.0, %v1874_v4 }
 0x47e   :  { %v1876_v7 = vmul.f32 %v3347_v3, %v1875_v5 }
 0x480   :  { %v1877_v28 = vadd.f32 %v3347_v3, %v1876_v7 }
 0x482   :  { %v1881_v9 = vsel %vm1880_vm4, %v3347_v3, %v1877_v28 }
 0x483   :  { %v1886_v11 = vsel %vm1883_vm5, %v1885_v8, %v1881_v9 }
 0x484   :  { %3089 = vmatpush.msk.msrb.mxu2 %vm1795_vm10, %v1886_v11 }
 0x485   :  { %3090 = vmatmul.msk.f32.vlgmr.msrb.gmra.mxu2 %vm1888_vm6, %v1826_v10 }
 0x508   :  { %v1912_v12 = vpop.f32.mrf.mxu2 }
 0x509   :  { %1917 = vperm.xlu1 %3331, %v1912_v12  }
 0x57b   :  { %v1918_v37 = vpop.permute.xlu1 %1917 }
 0x57c   :  { %v3642_v51 = vmul.f32 %v1918_v37, %v1824_v52 }
 0x57e   :  { %3091 = vmatpush.msk.msrb.mxu3 %vm1836_vm14, %v3642_v51 }
 0x57f   :  { %3092 = vmatmul.msk.f32.vlgmr.msrb.gmra.mxu3 %vm1832_vm15, %v3642_v51 }
 0x602   :  { %v1943_v14 = vpop.f32.mrf.mxu3 }
 0x603   :  { %3093 = vmatpush.msk.msra.mxu2 %vm1836_vm14, %v1943_v14 }
 0x604   :  { %3094 = vmatmul.msk.f32.vlgmr.msra.gmra.mxu2 %vm1832_vm15, %v1943_v14 }
 0x687   :  { %v1968_v16 = vpop.f32.mrf.mxu2 }
 0x688   :  { %3095 = vmatpush.msk.msra.mxu3 %vm1836_vm14, %v1968_v16 }
 0x689   :  { %3096 = vmatmul.msk.f32.vlgmr.msra.gmra.mxu3 %vm1832_vm15, %v1968_v16 }
 0x70c   :  { %v1993_v17 = vpop.f32.mrf.mxu3 }
 0x70d   :  { %v1996_v18 = vmul.f32 %v1993_v17, %v1993_v17 }
 0x70f   :  { %v1997_v19 = vsel %vm1828_vm13, %v1996_v18, 0.0 }
 0x710   :  { %1998 = vadd.xlane.f32.xlu2 %v1997_v19 }
 0x783   :  { %v1999_v20 = vpop.xlane.xlu2 %1998 }
 0x784   :  { %3097 = vmatpush.msk.msrb.mxu2 %vm1836_vm14, %v1999_v20 }
 0x785   :  { %3098 = vmatmul.msk.f32.vlgmr.msrb.gmra.mxu2 %vm1832_vm15, %v3629_v55 }
 0x808   :  { %v2020_v21 = vpop.f32.mrf.mxu2 }
 0x809   :  { %3348 = vrsqrt.f32 %v2020_v21  ;;  %vm2030_vm7 = vcmp.eq.f32.partialorder %v2020_v21, inf  ;;  %v2033_v26 = vand.u32 2147483648, %v2020_v21  ;;  %vm2032_vm8 = vcmp.eq.f32.partialorder %v2020_v21, 0.0 }
 0x80f   :  { %v3349_v25 = vpop.eup %3348 }
 0x810   :  { %v2024_v27 = vmul.f32 %v3349_v25, %v2020_v21 }
 0x812   :  { %v2025_v30 = vmul.f32 %v3349_v25, %v2024_v27 }
 0x814   :  { %v2026_v31 = vmul.f32 0.5, %v2025_v30 }
 0x816   :  { %v2027_v32 = vsub.f32 1.5, %v2026_v31 }
 0x818   :  { %v2028_v29 = vmul.f32 %v3349_v25, %v2027_v32 }
 0x81a   :  { %v2029_v24 = vmul.f32 %v2028_v29, %v2020_v21 }
 0x81c   :  { %v2031_v33 = vsel %vm2030_vm7, %v2020_v21, %v2029_v24 }
 0x81d   :  { %v2034_v34 = vsel %vm2032_vm8, %v2033_v26, %v2031_v33 }
 0x81e   :  { %v2035_v35 = vadd.f32 1e-30, %v2034_v34 }
 0x820   :  { %3350 = vrcp.f32 %v2035_v35  ;;  %v2047_v39 = vand.u32 2147483648, %v2035_v35  ;;  %v2045_v41 = vand.u32 2147483647, %v2035_v35  ;;  %vm2041_vm11 = vweird.f32 %v2035_v35 }
 0x822   :  { %v2048_v47 = vor.u32 1.1754944e-38, %v2047_v39  ;;  %vm2046_vm0 = vcmp.eq.f32.partialorder %v2045_v41, 8.507059e+37 }
 0x826   :  { %v3351_v36 = vpop.eup %3350 }
 0x827   :  { %v2037_v22 = vmul.f32 %v3351_v36, %v2035_v35  ;;  %vm2042_vm9 = vweird.f32 %v3351_v36 }
 0x828   :  { %vm2043_vm12 = vmor %vm2041_vm11, %vm2042_vm9 }
 0x829   :  { %v2038_v38 = vsub.f32 1.0, %v2037_v22 }
 0x82b   :  { %v2039_v40 = vmul.f32 %v3351_v36, %v2038_v38 }
 0x82d   :  { %v2040_v42 = vadd.f32 %v3351_v36, %v2039_v40 }
 0x82f   :  { %v2044_v49 = vsel %vm2043_vm12, %v3351_v36, %v2040_v42 }
 0x830   :  { %v2049_v44 = vsel %vm2046_vm0, %v2048_v47, %v2044_v49 }
 0x831   :  { %3099 = vmatpush.msk.msrb.mxu3 %vm1795_vm10, %v2049_v44  ;;  %vm2159_vm10 = vcmp.eq.s32.totalorder %v2156_v54, %v2158_v56 }
 0x832   :  { %3100 = vmatmul.msk.f32.vlgmr.msrb.gmra.mxu3 %vm1888_vm6, %v1826_v10  ;;  %v3107_v58 = vsel %vm2159_vm10, 1.0, %v3442_v57 }
 0x8b5   :  { %v2071_v45 = vpop.f32.mrf.mxu3 }
 0x8b6   :  { %2076 = vperm.xlu2 %3332, %v2071_v45  }
 0x910   :  { %v2077_v46 = vpop.permute.xlu2 %2076 }
 0x911   :  { %v2079_v48 = vmul.f32 %v2077_v46, %v1993_v17 }
 0x913   :  { %3101 = vmatpush.msk.msrb.mxu0 %vm1836_vm14, %v2079_v48 }
 0x914   :  { %3102 = vmatmul.msk.f32.vlgmr.msrb.gmra.mxu0 %vm1832_vm15, %v2079_v48 }
 0x991   :  { %v2102_v50 = vpop.f32.mrf.mxu0 }
 0x992   :  { %3103 = vmatpush.msk.msrb.mxu1 %vm1836_vm14, %v2102_v50 }
 0x993   :  { %3104 = vmatmul.msk.f32.vlgmr.msrb.gmra.mxu1 %vm1832_vm15, %v2102_v50 }
 0xa10   :  { %v2127_v52 = vpop.f32.mrf.mxu1 }
 0xa11   :  { %3105 = vmatpush.msk.msra.mxu2 %vm1836_vm14, %v2127_v52 }
 0xa12   :  { %3106 = vmatmul.msk.f32.vlgmr.msra.gmra.mxu2 %vm1832_vm15, %v2127_v52 }
 0xa95   :  { %v2152_v59 = vpop.f32.mrf.mxu2 }
 0xa96   :  { %v2162_v13 = vmul.f32 %v2152_v59, %v3642_v51  ;;  %v2189_v15 = vmul.f32 %v3107_v58, %v2152_v59 }
 0xa98   :  { %v2190_v43 = vsel %vm1828_vm13, %v2189_v15, 0.0  ;;  %v2163_v60 = vsel %vm1828_vm13, %v2162_v13, 0.0 }
 0xa99   :  { %2191 = vadd.xlane.f32.xlu0 %v2190_v43  ;;  %2164 = vadd.xlane.f32.xlu2 %v2163_v60 }
 0xb0c   :  { %v2192_v61 = vpop.xlane.xlu0 %2191  ;;  %v2165_v62 = vpop.xlane.xlu2 %2164 }
 0xb0d   :  { %3108 = vmatpush.msk.msra.mxu3 %vm1836_vm14, %v2165_v62  ;;  %3110 = vmatpush.msk.msra.mxu0 %vm1836_vm14, %v2192_v61 }
 0xb0e   :  { %3111 = vmatmul.msk.f32.vlgmr.msra.gmra.mxu0 %vm1832_vm15, %v3629_v55  ;;  %3109 = vmatmul.msk.f32.vlgmr.msra.gmra.mxu3 %vm1832_vm15, %v3629_v55 }
 0xb8b   :  { %v2213_v63 = vpop.f32.mrf.mxu0 }
 0xb8c   :  { %v2214_v0 = vadd.f32 1e-30, %v2213_v63 }
 0xb8e   :  { %3352 = vrcp.f32 %v2214_v0  ;;  %v2227_v5 = vand.u32 2147483648, %v2214_v0  ;;  %v2225_v7 = vand.u32 2147483647, %v2214_v0  ;;  %vm2221_vm1 = vweird.f32 %v2214_v0 }
 0xb90   :  { %v2228_v8 = vor.u32 1.1754944e-38, %v2227_v5  ;;  %vm2226_vm2 = vcmp.eq.f32.partialorder %v2225_v7, 8.507059e+37 }
 0xb91   :  { %v2186_v28 = vpop.f32.mrf.mxu3 }
 0xb94   :  { %v3353_v2 = vpop.eup %3352 }
 0xb95   :  { %v2217_v3 = vmul.f32 %v3353_v2, %v2214_v0  ;;  %vm2222_vm13 = vweird.f32 %v3353_v2 }
 0xb96   :  { %vm2223_vm14 = vmor %vm2221_vm1, %vm2222_vm13 }
 0xb97   :  { %v2218_v4 = vsub.f32 1.0, %v2217_v3 }
 0xb99   :  { %v2219_v6 = vmul.f32 %v3353_v2, %v2218_v4 }
 0xb9b   :  { %v2220_v23 = vadd.f32 %v3353_v2, %v2219_v6 }
 0xb9d   :  { %v2224_v9 = vsel %vm2223_vm14, %v3353_v2, %v2220_v23 }
 0xb9e   :  { %v2229_v10 = vsel %vm2226_vm2, %v2228_v8, %v2224_v9 }
 0xb9f   :  { %v2230_v11 = vmul.f32 %v2229_v10, %v2186_v28 }
 0xba1   :  { %v2231_v55 = vmul.f32 %v2230_v11, %v3634_v1 }
 0xba3   :  { %v2232_v12 = vmax.f32 %v2231_v55, 0.0 }
 0xba5   :  { %3354 = vrsqrt.f32 %v2232_v12  ;;  %vm2240_vm15 = vcmp.eq.f32.partialorder %v2232_v12, inf  ;;  %v2243_v20 = vand.u32 2147483648, %v2232_v12  ;;  %vm2242_vm4 = vcmp.eq.f32.partialorder %v2232_v12, 0.0 }
 0xbab   :  { %v3355_v37 = vpop.eup %3354 }
 0xbac   :  { %v2234_v51 = vmul.f32 %v3355_v37, %v2232_v12 }
 0xbae   :  { %v2235_v14 = vmul.f32 %v3355_v37, %v2234_v51 }
 0xbb0   :  { %v2236_v16 = vmul.f32 0.5, %v2235_v14 }
 0xbb2   :  { %v2237_v17 = vsub.f32 1.5, %v2236_v16 }
 0xbb4   :  { %v2238_v18 = vmul.f32 %v3355_v37, %v2237_v17 }
 0xbb6   :  { %v2239_v19 = vmul.f32 %v2238_v18, %v2232_v12 }
 0xbb8   :  { %v2241_v21 = vsel %vm2240_vm15, %v2232_v12, %v2239_v19 }
 0xbb9   :  { %v2244_v25 = vsel %vm2242_vm4, %v2243_v20, %v2241_v21 }
 0xbba   :  { %2246 = vst.msk [vmem:[%s3685_s8] sm:$0x3] %vm2245_vm3, %v2244_v25 }
 0xbbb   :  { %2251 = vsyncpa [#allocation3], 1 }
 0xbbc   :  { %2252 = vsyncpa [#allocation5], 1 }

</bundles_post_ra>
